<compile_context>
chip_gen: v6e
topology: v6e:2x2x1
jax: 0.10.0
libtpu: 0.0.40
codegen_flags: <defaults>
</compile_context>

<pallas_src>
import functools

import jax
import jax.numpy as jnp
from jax.experimental import pallas as pl
from jax.experimental.pallas import tpu as pltpu


def _layernorm(x, g, b, eps=1e-5):
    mean = jnp.mean(x, axis=-1, keepdims=True)
    var = jnp.mean((x - mean) ** 2, axis=-1, keepdims=True)
    return (x - mean) * jax.lax.rsqrt(var + eps) * g + b


def fused_decoder_kernel(nhead, num_layers,
                         mem_ref, tgt_ref, pos_ref,
                         wqk_ref, wv_ref, wo_ref, w1_ref, w2_ref,
                         vec_ref, b1_ref, fin_ref,
                         out_ref):
    """One grid step = one batch element; all layers + final LN fused.

    mem_ref / tgt_ref / pos_ref : (S, D)    (batch dim squeezed by BlockSpec)
    wqk_ref : (L, D, 2D)   stacked [Wq | Wk]
    wv_ref  : (L, D, D)
    wo_ref  : (L, D, D)
    w1_ref  : (L, D, F)
    w2_ref  : (L, F, D)
    vec_ref : (L, 9, D)    rows: bq, bk, bv, bo, b2, g2, be2, g3, be3
    b1_ref  : (L, 1, F)
    fin_ref : (2, D)       rows: final-norm gamma, beta
    """
    x = mem_ref[...]          # (S, D) running decoder state ("memory")
    tgt = tgt_ref[...]        # (S, D)
    pos = pos_ref[...]        # (S, D)
    S, D = x.shape
    H = nhead
    Dh = D // H
    scale = 1.0 / float(Dh) ** 0.5

    for l in range(num_layers):
        wqk = wqk_ref[l]      # (D, 2D)
        wv = wv_ref[l]        # (D, D)
        wo = wo_ref[l]        # (D, D)
        w1 = w1_ref[l]        # (D, F)
        w2 = w2_ref[l]        # (F, D)
        vec = vec_ref[l]      # (9, D)
        b1 = b1_ref[l]        # (1, F)

        bq, bk, bv_ = vec[0:1], vec[1:2], vec[2:3]
        bo, b2 = vec[3:4], vec[4:5]
        g2, be2 = vec[5:6], vec[6:7]
        g3, be3 = vec[7:8], vec[8:9]

        q_in = x + pos        # query/key input  (memory + m_pos)
        v_in = x + tgt        # value input and residual base (memory + tgt)

        # Fused Q/K projection (shared input), separate V projection.
        qk = jnp.dot(q_in, wqk, preferred_element_type=jnp.float32)      # (S, 2D)
        q = (qk[:, :D] + bq) * scale                                     # fold 1/sqrt(Dh)
        k = qk[:, D:] + bk
        v = jnp.dot(v_in, wv, preferred_element_type=jnp.float32) + bv_

        # Per-head attention, statically unrolled; output projection folded
        # per head (no lane-axis concat of head outputs).
        attn = jnp.zeros((S, D), jnp.float32)
        for h in range(H):
            sl = slice(h * Dh, (h + 1) * Dh)
            qh = q[:, sl]                                                # (S, Dh)
            kh = k[:, sl]
            vh = v[:, sl]
            s_h = jnp.dot(qh, kh.T, preferred_element_type=jnp.float32)  # (S, S)
            s_h = s_h - jnp.max(s_h, axis=-1, keepdims=True)
            p_h = jnp.exp(s_h)
            denom = jnp.sum(p_h, axis=-1, keepdims=True)
            p_h = p_h * pl.reciprocal(denom, approx=True)
            o_h = jnp.dot(p_h, vh, preferred_element_type=jnp.float32)   # (S, Dh)
            attn = attn + jnp.dot(o_h, wo[sl, :],
                                  preferred_element_type=jnp.float32)    # (S, D)
        attn = attn + bo

        # residual + norm2
        x2 = _layernorm(v_in + attn, g2, be2)

        # feed-forward (ReLU), residual + norm3
        h1 = jnp.dot(x2, w1, preferred_element_type=jnp.float32) + b1
        h1 = jnp.maximum(h1, 0.0)
        ff = jnp.dot(h1, w2, preferred_element_type=jnp.float32) + b2
        x = _layernorm(x2 + ff, g3, be3)

    fin = fin_ref[...]
    out_ref[...] = _layernorm(x, fin[0:1], fin[1:2]).astype(out_ref.dtype)


def transformer_forward(src, tgt, src_emb, packed, nhead, num_layers):
    """src, tgt: NCHW (B, D, H, W); src_emb (m_pos): (S, B, D).  Returns (B, S, D)."""
    B, D, Hh, Ww = src.shape
    S = Hh * Ww
    # Tiny, one-time layout glue (free relative to the fused kernel).
    mem = src.reshape(B, D, S).transpose(0, 2, 1)      # (B, S, D)
    tgt_f = tgt.reshape(B, D, S).transpose(0, 2, 1)    # (B, S, D)
    pos = src_emb.transpose(1, 0, 2)                   # (B, S, D)

    seq_spec = pl.BlockSpec((None, S, D), lambda b: (b, 0, 0))

    def wspec(arr):
        nd = arr.ndim
        return pl.BlockSpec(arr.shape, lambda b, _nd=nd: (0,) * _nd)

    weights = [packed['wqk'], packed['wv'], packed['wo'], packed['w1'],
               packed['w2'], packed['vec'], packed['b1'], packed['fin']]

    kernel = functools.partial(fused_decoder_kernel, nhead, num_layers)
    return pl.pallas_call(
        kernel,
        out_shape=jax.ShapeDtypeStruct((B, S, D), src.dtype),
        grid=(B,),
        in_specs=[seq_spec, seq_spec, seq_spec] + [wspec(w) for w in weights],
        out_specs=seq_spec,
        compiler_params=pltpu.CompilerParams(dimension_semantics=("parallel",)),
    )(mem, tgt_f, pos, *weights)


def init_params(key, d_model, nhead, dim_feedforward, num_layers):
    """Deterministic xavier-uniform init for weights (dim>1), zeros/ones otherwise
    (mirrors Transformer._reset_parameters on an eval-mode module)."""
    def xav(k, din, dout, fan_sum=None):
        fan_sum = (din + dout) if fan_sum is None else fan_sum
        lim = (6.0 / fan_sum) ** 0.5
        # stored as (in, out) so kernels do  y = x @ W + b
        return jax.random.uniform(k, (din, dout), jnp.float32, -lim, lim)

    layers = []
    keys = jax.random.split(key, num_layers)
    zeros_d = jnp.zeros((1, d_model), jnp.float32)
    ones_d = jnp.ones((1, d_model), jnp.float32)
    for lk in keys:
        ks = jax.random.split(lk, 6)
        # torch in_proj_weight is (3D, D) -> xavier fan over 4*D
        fan_in_proj = 3 * d_model + d_model
        layers.append(dict(
            wq=xav(ks[0], d_model, d_model, fan_in_proj), bq=zeros_d,
            wk=xav(ks[1], d_model, d_model, fan_in_proj), bk=zeros_d,
            wv=xav(ks[2], d_model, d_model, fan_in_proj), bv=zeros_d,
            wo=xav(ks[3], d_model, d_model), bo=zeros_d,
            w1=xav(ks[4], d_model, dim_feedforward),
            b1=jnp.zeros((1, dim_feedforward), jnp.float32),
            w2=xav(ks[5], dim_feedforward, d_model), b2=zeros_d,
            g2=ones_d, be2=zeros_d,
            g3=ones_d, be3=zeros_d,
        ))
    return dict(layers=layers, norm_g=ones_d, norm_b=zeros_d)


def pack_params(params):
    """Pack per-layer params into a few stacked slabs (fewer, bigger DMAs)."""
    layers = params['layers']
    wqk = jnp.stack([jnp.concatenate([p['wq'], p['wk']], axis=1) for p in layers])
    wv = jnp.stack([p['wv'] for p in layers])
    wo = jnp.stack([p['wo'] for p in layers])
    w1 = jnp.stack([p['w1'] for p in layers])
    w2 = jnp.stack([p['w2'] for p in layers])
    vec = jnp.stack([jnp.concatenate(
        [p['bq'], p['bk'], p['bv'], p['bo'], p['b2'],
         p['g2'], p['be2'], p['g3'], p['be3']], axis=0) for p in layers])
    b1 = jnp.stack([p['b1'] for p in layers])                       # (L, 1, F)
    fin = jnp.concatenate([params['norm_g'], params['norm_b']], 0)  # (2, D)
    return dict(wqk=wqk, wv=wv, wo=wo, w1=w1, w2=w2, vec=vec, b1=b1, fin=fin)


if __name__ == "__main__":
    # small shapes consistent with the module: d_model channels, spatial 4x4
    d_model, nhead, dim_feedforward, num_decoder_layers = 32, 4, 64, 2
    B, Hh, Ww = 2, 4, 4
    S = Hh * Ww

    key = jax.random.PRNGKey(0)
    k_src, k_tgt, k_emb, k_par = jax.random.split(key, 4)
    src = jax.random.normal(k_src, (B, d_model, Hh, Ww), jnp.float32)
    tgt = jax.random.normal(k_tgt, (B, d_model, Hh, Ww), jnp.float32)
    src_emb = jax.random.normal(k_emb, (S, B, d_model), jnp.float32)  # m_pos, (S, B, D)

    params = init_params(k_par, d_model, nhead, dim_feedforward, num_decoder_layers)
    packed = pack_params(params)

    out = transformer_forward(src, tgt, src_emb, packed, nhead, num_decoder_layers)
    out = jax.block_until_ready(out)
    assert out.shape == (B, S, d_model), out.shape
    assert bool(jnp.all(jnp.isfinite(out)))
    print("KERNEL_OK")
</pallas_src>

<mosaic_0001>
module attributes {stable_mosaic.version = 11 : i64} {
  func.func @fused_decoder_kernel(%arg0: i32, %arg1: memref<1x16x32xf32, #tpu.memory_space<vmem>>, %arg2: memref<1x16x32xf32, #tpu.memory_space<vmem>>, %arg3: memref<1x16x32xf32, #tpu.memory_space<vmem>>, %arg4: memref<2x32x64xf32, #tpu.memory_space<vmem>>, %arg5: memref<2x32x32xf32, #tpu.memory_space<vmem>>, %arg6: memref<2x32x32xf32, #tpu.memory_space<vmem>>, %arg7: memref<2x32x64xf32, #tpu.memory_space<vmem>>, %arg8: memref<2x64x32xf32, #tpu.memory_space<vmem>>, %arg9: memref<2x9x32xf32, #tpu.memory_space<vmem>>, %arg10: memref<2x1x64xf32, #tpu.memory_space<vmem>>, %arg11: memref<2x32xf32, #tpu.memory_space<vmem>>, %arg12: memref<1x16x32xf32, #tpu.memory_space<vmem>>) attributes {dimension_semantics = [#tpu.dimension_semantics<parallel>], iteration_bounds = array<i64: 2>, scalar_prefetch = 0 : i64, scratch_operands = 0 : i64, tpu.core_type = #tpu.core_type<tc>, window_params = [{transform_indices = @transform_0, window_bounds = array<i64: 1, 16, 32>}, {transform_indices = @transform_1, window_bounds = array<i64: 1, 16, 32>}, {transform_indices = @transform_2, window_bounds = array<i64: 1, 16, 32>}, {pipeline_mode = #tpu.pipeline_mode<synchronous>, transform_indices = @transform_3, window_bounds = array<i64: 2, 32, 64>}, {pipeline_mode = #tpu.pipeline_mode<synchronous>, transform_indices = @transform_4, window_bounds = array<i64: 2, 32, 32>}, {pipeline_mode = #tpu.pipeline_mode<synchronous>, transform_indices = @transform_5, window_bounds = array<i64: 2, 32, 32>}, {pipeline_mode = #tpu.pipeline_mode<synchronous>, transform_indices = @transform_6, window_bounds = array<i64: 2, 32, 64>}, {pipeline_mode = #tpu.pipeline_mode<synchronous>, transform_indices = @transform_7, window_bounds = array<i64: 2, 64, 32>}, {pipeline_mode = #tpu.pipeline_mode<synchronous>, transform_indices = @transform_8, window_bounds = array<i64: 2, 9, 32>}, {pipeline_mode = #tpu.pipeline_mode<synchronous>, transform_indices = @transform_9, window_bounds = array<i64: 2, 1, 64>}, {pipeline_mode = #tpu.pipeline_mode<synchronous>, transform_indices = @transform_10, window_bounds = array<i64: 2, 32>}, {transform_indices = @transform_11, window_bounds = array<i64: 1, 16, 32>}]} {
    %c0 = arith.constant 0 : index
    %c0_0 = arith.constant 0 : index
    %c0_1 = arith.constant 0 : index
    %0 = vector.load %arg1[%c0, %c0_0, %c0_1] : memref<1x16x32xf32, #tpu.memory_space<vmem>>, vector<1x16x32xf32>
    %1 = vector.shape_cast %0 : vector<1x16x32xf32> to vector<16x32xf32>
    %c0_2 = arith.constant 0 : index
    %c0_3 = arith.constant 0 : index
    %c0_4 = arith.constant 0 : index
    %2 = vector.load %arg2[%c0_2, %c0_3, %c0_4] : memref<1x16x32xf32, #tpu.memory_space<vmem>>, vector<1x16x32xf32>
    %3 = vector.shape_cast %2 : vector<1x16x32xf32> to vector<16x32xf32>
    %c0_5 = arith.constant 0 : index
    %c0_6 = arith.constant 0 : index
    %c0_7 = arith.constant 0 : index
    %4 = vector.load %arg3[%c0_5, %c0_6, %c0_7] : memref<1x16x32xf32, #tpu.memory_space<vmem>>, vector<1x16x32xf32>
    %5 = vector.shape_cast %4 : vector<1x16x32xf32> to vector<16x32xf32>
    %c0_8 = arith.constant 0 : index
    %c0_9 = arith.constant 0 : index
    %c0_10 = arith.constant 0 : index
    %6 = vector.load %arg4[%c0_8, %c0_9, %c0_10] : memref<2x32x64xf32, #tpu.memory_space<vmem>>, vector<1x32x64xf32>
    %7 = vector.shape_cast %6 : vector<1x32x64xf32> to vector<32x64xf32>
    %c0_11 = arith.constant 0 : index
    %c0_12 = arith.constant 0 : index
    %c0_13 = arith.constant 0 : index
    %8 = vector.load %arg5[%c0_11, %c0_12, %c0_13] : memref<2x32x32xf32, #tpu.memory_space<vmem>>, vector<1x32x32xf32>
    %9 = vector.shape_cast %8 : vector<1x32x32xf32> to vector<32x32xf32>
    %c0_14 = arith.constant 0 : index
    %c0_15 = arith.constant 0 : index
    %c0_16 = arith.constant 0 : index
    %10 = vector.load %arg6[%c0_14, %c0_15, %c0_16] : memref<2x32x32xf32, #tpu.memory_space<vmem>>, vector<1x32x32xf32>
    %11 = vector.shape_cast %10 : vector<1x32x32xf32> to vector<32x32xf32>
    %c0_17 = arith.constant 0 : index
    %c0_18 = arith.constant 0 : index
    %c0_19 = arith.constant 0 : index
    %12 = vector.load %arg7[%c0_17, %c0_18, %c0_19] : memref<2x32x64xf32, #tpu.memory_space<vmem>>, vector<1x32x64xf32>
    %13 = vector.shape_cast %12 : vector<1x32x64xf32> to vector<32x64xf32>
    %c0_20 = arith.constant 0 : index
    %c0_21 = arith.constant 0 : index
    %c0_22 = arith.constant 0 : index
    %14 = vector.load %arg8[%c0_20, %c0_21, %c0_22] : memref<2x64x32xf32, #tpu.memory_space<vmem>>, vector<1x64x32xf32>
    %15 = vector.shape_cast %14 : vector<1x64x32xf32> to vector<64x32xf32>
    %c0_23 = arith.constant 0 : index
    %c0_24 = arith.constant 0 : index
    %c0_25 = arith.constant 0 : index
    %16 = vector.load %arg9[%c0_23, %c0_24, %c0_25] : memref<2x9x32xf32, #tpu.memory_space<vmem>>, vector<1x9x32xf32>
    %17 = vector.shape_cast %16 : vector<1x9x32xf32> to vector<9x32xf32>
    %c0_26 = arith.constant 0 : index
    %c0_27 = arith.constant 0 : index
    %c0_28 = arith.constant 0 : index
    %18 = vector.load %arg10[%c0_26, %c0_27, %c0_28] : memref<2x1x64xf32, #tpu.memory_space<vmem>>, vector<1x1x64xf32>
    %19 = vector.shape_cast %18 : vector<1x1x64xf32> to vector<1x64xf32>
    %20 = vector.extract_strided_slice %17 {offsets = [0, 0], sizes = [1, 32], strides = [1, 1]} : vector<9x32xf32> to vector<1x32xf32>
    %21 = vector.extract_strided_slice %17 {offsets = [1, 0], sizes = [1, 32], strides = [1, 1]} : vector<9x32xf32> to vector<1x32xf32>
    %22 = vector.extract_strided_slice %17 {offsets = [2, 0], sizes = [1, 32], strides = [1, 1]} : vector<9x32xf32> to vector<1x32xf32>
    %23 = vector.extract_strided_slice %17 {offsets = [3, 0], sizes = [1, 32], strides = [1, 1]} : vector<9x32xf32> to vector<1x32xf32>
    %24 = vector.extract_strided_slice %17 {offsets = [4, 0], sizes = [1, 32], strides = [1, 1]} : vector<9x32xf32> to vector<1x32xf32>
    %25 = vector.extract_strided_slice %17 {offsets = [5, 0], sizes = [1, 32], strides = [1, 1]} : vector<9x32xf32> to vector<1x32xf32>
    %26 = vector.extract_strided_slice %17 {offsets = [6, 0], sizes = [1, 32], strides = [1, 1]} : vector<9x32xf32> to vector<1x32xf32>
    %27 = vector.extract_strided_slice %17 {offsets = [7, 0], sizes = [1, 32], strides = [1, 1]} : vector<9x32xf32> to vector<1x32xf32>
    %28 = vector.extract_strided_slice %17 {offsets = [8, 0], sizes = [1, 32], strides = [1, 1]} : vector<9x32xf32> to vector<1x32xf32>
    %29 = arith.addf %1, %5 : vector<16x32xf32>
    %30 = arith.addf %1, %3 : vector<16x32xf32>
    %cst = arith.constant dense<0.000000e+00> : vector<16x64xf32>
    %31 = tpu.matmul %29, %7, %cst {dimension_numbers = #tpu.dot_dimension_numbers<[1], [0], [0], [1], [0, 0, 1, 1], [], []>} : vector<16x32xf32>, vector<32x64xf32>, vector<16x64xf32> -> vector<16x64xf32>
    %32 = vector.extract_strided_slice %31 {offsets = [0, 0], sizes = [16, 32], strides = [1, 1]} : vector<16x64xf32> to vector<16x32xf32>
    %33 = vector.broadcast %20 : vector<1x32xf32> to vector<16x32xf32>
    %34 = arith.addf %32, %33 : vector<16x32xf32>
    %cst_29 = arith.constant 0.353553385 : f32
    %35 = vector.broadcast %cst_29 : f32 to vector<16x32xf32>
    %36 = arith.mulf %34, %35 : vector<16x32xf32>
    %37 = vector.extract_strided_slice %31 {offsets = [0, 32], sizes = [16, 32], strides = [1, 1]} : vector<16x64xf32> to vector<16x32xf32>
    %38 = vector.broadcast %21 : vector<1x32xf32> to vector<16x32xf32>
    %39 = arith.addf %37, %38 : vector<16x32xf32>
    %cst_30 = arith.constant dense<0.000000e+00> : vector<16x32xf32>
    %40 = tpu.matmul %30, %9, %cst_30 {dimension_numbers = #tpu.dot_dimension_numbers<[1], [0], [0], [1], [0, 0, 1, 1], [], []>} : vector<16x32xf32>, vector<32x32xf32>, vector<16x32xf32> -> vector<16x32xf32>
    %41 = vector.broadcast %22 : vector<1x32xf32> to vector<16x32xf32>
    %42 = arith.addf %40, %41 : vector<16x32xf32>
    %cst_31 = arith.constant 0.000000e+00 : f32
    %43 = vector.broadcast %cst_31 : f32 to vector<16x32xf32>
    %44 = vector.extract_strided_slice %36 {offsets = [0, 0], sizes = [16, 8], strides = [1, 1]} : vector<16x32xf32> to vector<16x8xf32>
    %45 = vector.extract_strided_slice %39 {offsets = [0, 0], sizes = [16, 8], strides = [1, 1]} : vector<16x32xf32> to vector<16x8xf32>
    %46 = vector.extract_strided_slice %42 {offsets = [0, 0], sizes = [16, 8], strides = [1, 1]} : vector<16x32xf32> to vector<16x8xf32>
    %47 = tpu.transpose %45, [1, 0] : vector<16x8xf32> -> vector<8x16xf32>
    %cst_32 = arith.constant dense<0.000000e+00> : vector<16x16xf32>
    %48 = tpu.matmul %44, %47, %cst_32 {dimension_numbers = #tpu.dot_dimension_numbers<[1], [0], [0], [1], [0, 0, 1, 1], [], []>} : vector<16x8xf32>, vector<8x16xf32>, vector<16x16xf32> -> vector<16x16xf32>
    %cst_33 = arith.constant dense<0xFF800000> : vector<16xf32>
    %49 = vector.multi_reduction <maximumf>, %48, %cst_33 [1] : vector<16x16xf32> to vector<16xf32>
    %50 = vector.shape_cast %49 : vector<16xf32> to vector<16x1xf32>
    %51 = vector.broadcast %50 : vector<16x1xf32> to vector<16x16xf32>
    %52 = arith.subf %48, %51 : vector<16x16xf32>
    %53 = math.exp %52 : vector<16x16xf32>
    %cst_34 = arith.constant dense<0.000000e+00> : vector<16xf32>
    %54 = vector.multi_reduction <add>, %53, %cst_34 [1] : vector<16x16xf32> to vector<16xf32>
    %55 = vector.shape_cast %54 : vector<16xf32> to vector<16x1xf32>
    %56 = tpu.reciprocal %55 {approx = true} : vector<16x1xf32> -> vector<16x1xf32>
    %57 = vector.broadcast %56 : vector<16x1xf32> to vector<16x16xf32>
    %58 = arith.mulf %53, %57 : vector<16x16xf32>
    %cst_35 = arith.constant dense<0.000000e+00> : vector<16x8xf32>
    %59 = tpu.matmul %58, %46, %cst_35 {dimension_numbers = #tpu.dot_dimension_numbers<[1], [0], [0], [1], [0, 0, 1, 1], [], []>} : vector<16x16xf32>, vector<16x8xf32>, vector<16x8xf32> -> vector<16x8xf32>
    %60 = vector.extract_strided_slice %11 {offsets = [0, 0], sizes = [8, 32], strides = [1, 1]} : vector<32x32xf32> to vector<8x32xf32>
    %cst_36 = arith.constant dense<0.000000e+00> : vector<16x32xf32>
    %61 = tpu.matmul %59, %60, %cst_36 {dimension_numbers = #tpu.dot_dimension_numbers<[1], [0], [0], [1], [0, 0, 1, 1], [], []>} : vector<16x8xf32>, vector<8x32xf32>, vector<16x32xf32> -> vector<16x32xf32>
    %62 = arith.addf %43, %61 : vector<16x32xf32>
    %63 = vector.extract_strided_slice %36 {offsets = [0, 8], sizes = [16, 8], strides = [1, 1]} : vector<16x32xf32> to vector<16x8xf32>
    %64 = vector.extract_strided_slice %39 {offsets = [0, 8], sizes = [16, 8], strides = [1, 1]} : vector<16x32xf32> to vector<16x8xf32>
    %65 = vector.extract_strided_slice %42 {offsets = [0, 8], sizes = [16, 8], strides = [1, 1]} : vector<16x32xf32> to vector<16x8xf32>
    %66 = tpu.transpose %64, [1, 0] : vector<16x8xf32> -> vector<8x16xf32>
    %cst_37 = arith.constant dense<0.000000e+00> : vector<16x16xf32>
    %67 = tpu.matmul %63, %66, %cst_37 {dimension_numbers = #tpu.dot_dimension_numbers<[1], [0], [0], [1], [0, 0, 1, 1], [], []>} : vector<16x8xf32>, vector<8x16xf32>, vector<16x16xf32> -> vector<16x16xf32>
    %cst_38 = arith.constant dense<0xFF800000> : vector<16xf32>
    %68 = vector.multi_reduction <maximumf>, %67, %cst_38 [1] : vector<16x16xf32> to vector<16xf32>
    %69 = vector.shape_cast %68 : vector<16xf32> to vector<16x1xf32>
    %70 = vector.broadcast %69 : vector<16x1xf32> to vector<16x16xf32>
    %71 = arith.subf %67, %70 : vector<16x16xf32>
    %72 = math.exp %71 : vector<16x16xf32>
    %cst_39 = arith.constant dense<0.000000e+00> : vector<16xf32>
    %73 = vector.multi_reduction <add>, %72, %cst_39 [1] : vector<16x16xf32> to vector<16xf32>
    %74 = vector.shape_cast %73 : vector<16xf32> to vector<16x1xf32>
    %75 = tpu.reciprocal %74 {approx = true} : vector<16x1xf32> -> vector<16x1xf32>
    %76 = vector.broadcast %75 : vector<16x1xf32> to vector<16x16xf32>
    %77 = arith.mulf %72, %76 : vector<16x16xf32>
    %cst_40 = arith.constant dense<0.000000e+00> : vector<16x8xf32>
    %78 = tpu.matmul %77, %65, %cst_40 {dimension_numbers = #tpu.dot_dimension_numbers<[1], [0], [0], [1], [0, 0, 1, 1], [], []>} : vector<16x16xf32>, vector<16x8xf32>, vector<16x8xf32> -> vector<16x8xf32>
    %79 = vector.extract_strided_slice %11 {offsets = [8, 0], sizes = [8, 32], strides = [1, 1]} : vector<32x32xf32> to vector<8x32xf32>
    %cst_41 = arith.constant dense<0.000000e+00> : vector<16x32xf32>
    %80 = tpu.matmul %78, %79, %cst_41 {dimension_numbers = #tpu.dot_dimension_numbers<[1], [0], [0], [1], [0, 0, 1, 1], [], []>} : vector<16x8xf32>, vector<8x32xf32>, vector<16x32xf32> -> vector<16x32xf32>
    %81 = arith.addf %62, %80 : vector<16x32xf32>
    %82 = vector.extract_strided_slice %36 {offsets = [0, 16], sizes = [16, 8], strides = [1, 1]} : vector<16x32xf32> to vector<16x8xf32>
    %83 = vector.extract_strided_slice %39 {offsets = [0, 16], sizes = [16, 8], strides = [1, 1]} : vector<16x32xf32> to vector<16x8xf32>
    %84 = vector.extract_strided_slice %42 {offsets = [0, 16], sizes = [16, 8], strides = [1, 1]} : vector<16x32xf32> to vector<16x8xf32>
    %85 = tpu.transpose %83, [1, 0] : vector<16x8xf32> -> vector<8x16xf32>
    %cst_42 = arith.constant dense<0.000000e+00> : vector<16x16xf32>
    %86 = tpu.matmul %82, %85, %cst_42 {dimension_numbers = #tpu.dot_dimension_numbers<[1], [0], [0], [1], [0, 0, 1, 1], [], []>} : vector<16x8xf32>, vector<8x16xf32>, vector<16x16xf32> -> vector<16x16xf32>
    %cst_43 = arith.constant dense<0xFF800000> : vector<16xf32>
    %87 = vector.multi_reduction <maximumf>, %86, %cst_43 [1] : vector<16x16xf32> to vector<16xf32>
    %88 = vector.shape_cast %87 : vector<16xf32> to vector<16x1xf32>
    %89 = vector.broadcast %88 : vector<16x1xf32> to vector<16x16xf32>
    %90 = arith.subf %86, %89 : vector<16x16xf32>
    %91 = math.exp %90 : vector<16x16xf32>
    %cst_44 = arith.constant dense<0.000000e+00> : vector<16xf32>
    %92 = vector.multi_reduction <add>, %91, %cst_44 [1] : vector<16x16xf32> to vector<16xf32>
    %93 = vector.shape_cast %92 : vector<16xf32> to vector<16x1xf32>
    %94 = tpu.reciprocal %93 {approx = true} : vector<16x1xf32> -> vector<16x1xf32>
    %95 = vector.broadcast %94 : vector<16x1xf32> to vector<16x16xf32>
    %96 = arith.mulf %91, %95 : vector<16x16xf32>
    %cst_45 = arith.constant dense<0.000000e+00> : vector<16x8xf32>
    %97 = tpu.matmul %96, %84, %cst_45 {dimension_numbers = #tpu.dot_dimension_numbers<[1], [0], [0], [1], [0, 0, 1, 1], [], []>} : vector<16x16xf32>, vector<16x8xf32>, vector<16x8xf32> -> vector<16x8xf32>
    %98 = vector.extract_strided_slice %11 {offsets = [16, 0], sizes = [8, 32], strides = [1, 1]} : vector<32x32xf32> to vector<8x32xf32>
    %cst_46 = arith.constant dense<0.000000e+00> : vector<16x32xf32>
    %99 = tpu.matmul %97, %98, %cst_46 {dimension_numbers = #tpu.dot_dimension_numbers<[1], [0], [0], [1], [0, 0, 1, 1], [], []>} : vector<16x8xf32>, vector<8x32xf32>, vector<16x32xf32> -> vector<16x32xf32>
    %100 = arith.addf %81, %99 : vector<16x32xf32>
    %101 = vector.extract_strided_slice %36 {offsets = [0, 24], sizes = [16, 8], strides = [1, 1]} : vector<16x32xf32> to vector<16x8xf32>
    %102 = vector.extract_strided_slice %39 {offsets = [0, 24], sizes = [16, 8], strides = [1, 1]} : vector<16x32xf32> to vector<16x8xf32>
    %103 = vector.extract_strided_slice %42 {offsets = [0, 24], sizes = [16, 8], strides = [1, 1]} : vector<16x32xf32> to vector<16x8xf32>
    %104 = tpu.transpose %102, [1, 0] : vector<16x8xf32> -> vector<8x16xf32>
    %cst_47 = arith.constant dense<0.000000e+00> : vector<16x16xf32>
    %105 = tpu.matmul %101, %104, %cst_47 {dimension_numbers = #tpu.dot_dimension_numbers<[1], [0], [0], [1], [0, 0, 1, 1], [], []>} : vector<16x8xf32>, vector<8x16xf32>, vector<16x16xf32> -> vector<16x16xf32>
    %cst_48 = arith.constant dense<0xFF800000> : vector<16xf32>
    %106 = vector.multi_reduction <maximumf>, %105, %cst_48 [1] : vector<16x16xf32> to vector<16xf32>
    %107 = vector.shape_cast %106 : vector<16xf32> to vector<16x1xf32>
    %108 = vector.broadcast %107 : vector<16x1xf32> to vector<16x16xf32>
    %109 = arith.subf %105, %108 : vector<16x16xf32>
    %110 = math.exp %109 : vector<16x16xf32>
    %cst_49 = arith.constant dense<0.000000e+00> : vector<16xf32>
    %111 = vector.multi_reduction <add>, %110, %cst_49 [1] : vector<16x16xf32> to vector<16xf32>
    %112 = vector.shape_cast %111 : vector<16xf32> to vector<16x1xf32>
    %113 = tpu.reciprocal %112 {approx = true} : vector<16x1xf32> -> vector<16x1xf32>
    %114 = vector.broadcast %113 : vector<16x1xf32> to vector<16x16xf32>
    %115 = arith.mulf %110, %114 : vector<16x16xf32>
    %cst_50 = arith.constant dense<0.000000e+00> : vector<16x8xf32>
    %116 = tpu.matmul %115, %103, %cst_50 {dimension_numbers = #tpu.dot_dimension_numbers<[1], [0], [0], [1], [0, 0, 1, 1], [], []>} : vector<16x16xf32>, vector<16x8xf32>, vector<16x8xf32> -> vector<16x8xf32>
    %117 = vector.extract_strided_slice %11 {offsets = [24, 0], sizes = [8, 32], strides = [1, 1]} : vector<32x32xf32> to vector<8x32xf32>
    %cst_51 = arith.constant dense<0.000000e+00> : vector<16x32xf32>
    %118 = tpu.matmul %116, %117, %cst_51 {dimension_numbers = #tpu.dot_dimension_numbers<[1], [0], [0], [1], [0, 0, 1, 1], [], []>} : vector<16x8xf32>, vector<8x32xf32>, vector<16x32xf32> -> vector<16x32xf32>
    %119 = arith.addf %100, %118 : vector<16x32xf32>
    %120 = vector.broadcast %23 : vector<1x32xf32> to vector<16x32xf32>
    %121 = arith.addf %119, %120 : vector<16x32xf32>
    %122 = arith.addf %30, %121 : vector<16x32xf32>
    %cst_52 = arith.constant dense<0.000000e+00> : vector<16xf32>
    %123 = vector.multi_reduction <add>, %122, %cst_52 [1] : vector<16x32xf32> to vector<16xf32>
    %124 = vector.shape_cast %123 : vector<16xf32> to vector<16x1xf32>
    %cst_53 = arith.constant 3.200000e+01 : f32
    %125 = vector.broadcast %cst_53 : f32 to vector<16x1xf32>
    %126 = arith.divf %124, %125 : vector<16x1xf32>
    %127 = vector.broadcast %126 : vector<16x1xf32> to vector<16x32xf32>
    %128 = arith.subf %122, %127 : vector<16x32xf32>
    %129 = arith.mulf %128, %128 : vector<16x32xf32>
    %cst_54 = arith.constant dense<0.000000e+00> : vector<16xf32>
    %130 = vector.multi_reduction <add>, %129, %cst_54 [1] : vector<16x32xf32> to vector<16xf32>
    %131 = vector.shape_cast %130 : vector<16xf32> to vector<16x1xf32>
    %cst_55 = arith.constant 3.200000e+01 : f32
    %132 = vector.broadcast %cst_55 : f32 to vector<16x1xf32>
    %133 = arith.divf %131, %132 : vector<16x1xf32>
    %134 = vector.broadcast %126 : vector<16x1xf32> to vector<16x32xf32>
    %135 = arith.subf %122, %134 : vector<16x32xf32>
    %cst_56 = arith.constant 9.99999974E-6 : f32
    %136 = vector.broadcast %cst_56 : f32 to vector<16x1xf32>
    %137 = arith.addf %133, %136 : vector<16x1xf32>
    %138 = math.rsqrt %137 : vector<16x1xf32>
    %139 = vector.broadcast %138 : vector<16x1xf32> to vector<16x32xf32>
    %140 = arith.mulf %135, %139 : vector<16x32xf32>
    %141 = vector.broadcast %25 : vector<1x32xf32> to vector<16x32xf32>
    %142 = arith.mulf %140, %141 : vector<16x32xf32>
    %143 = vector.broadcast %26 : vector<1x32xf32> to vector<16x32xf32>
    %144 = arith.addf %142, %143 : vector<16x32xf32>
    %cst_57 = arith.constant dense<0.000000e+00> : vector<16x64xf32>
    %145 = tpu.matmul %144, %13, %cst_57 {dimension_numbers = #tpu.dot_dimension_numbers<[1], [0], [0], [1], [0, 0, 1, 1], [], []>} : vector<16x32xf32>, vector<32x64xf32>, vector<16x64xf32> -> vector<16x64xf32>
    %146 = vector.broadcast %19 : vector<1x64xf32> to vector<16x64xf32>
    %147 = arith.addf %145, %146 : vector<16x64xf32>
    %cst_58 = arith.constant 0.000000e+00 : f32
    %148 = vector.broadcast %cst_58 : f32 to vector<16x64xf32>
    %149 = arith.maximumf %147, %148 : vector<16x64xf32>
    %cst_59 = arith.constant dense<0.000000e+00> : vector<16x32xf32>
    %150 = tpu.matmul %149, %15, %cst_59 {dimension_numbers = #tpu.dot_dimension_numbers<[1], [0], [0], [1], [0, 0, 1, 1], [], []>} : vector<16x64xf32>, vector<64x32xf32>, vector<16x32xf32> -> vector<16x32xf32>
    %151 = vector.broadcast %24 : vector<1x32xf32> to vector<16x32xf32>
    %152 = arith.addf %150, %151 : vector<16x32xf32>
    %153 = arith.addf %144, %152 : vector<16x32xf32>
    %cst_60 = arith.constant dense<0.000000e+00> : vector<16xf32>
    %154 = vector.multi_reduction <add>, %153, %cst_60 [1] : vector<16x32xf32> to vector<16xf32>
    %155 = vector.shape_cast %154 : vector<16xf32> to vector<16x1xf32>
    %cst_61 = arith.constant 3.200000e+01 : f32
    %156 = vector.broadcast %cst_61 : f32 to vector<16x1xf32>
    %157 = arith.divf %155, %156 : vector<16x1xf32>
    %158 = vector.broadcast %157 : vector<16x1xf32> to vector<16x32xf32>
    %159 = arith.subf %153, %158 : vector<16x32xf32>
    %160 = arith.mulf %159, %159 : vector<16x32xf32>
    %cst_62 = arith.constant dense<0.000000e+00> : vector<16xf32>
    %161 = vector.multi_reduction <add>, %160, %cst_62 [1] : vector<16x32xf32> to vector<16xf32>
    %162 = vector.shape_cast %161 : vector<16xf32> to vector<16x1xf32>
    %cst_63 = arith.constant 3.200000e+01 : f32
    %163 = vector.broadcast %cst_63 : f32 to vector<16x1xf32>
    %164 = arith.divf %162, %163 : vector<16x1xf32>
    %165 = vector.broadcast %157 : vector<16x1xf32> to vector<16x32xf32>
    %166 = arith.subf %153, %165 : vector<16x32xf32>
    %cst_64 = arith.constant 9.99999974E-6 : f32
    %167 = vector.broadcast %cst_64 : f32 to vector<16x1xf32>
    %168 = arith.addf %164, %167 : vector<16x1xf32>
    %169 = math.rsqrt %168 : vector<16x1xf32>
    %170 = vector.broadcast %169 : vector<16x1xf32> to vector<16x32xf32>
    %171 = arith.mulf %166, %170 : vector<16x32xf32>
    %172 = vector.broadcast %27 : vector<1x32xf32> to vector<16x32xf32>
    %173 = arith.mulf %171, %172 : vector<16x32xf32>
    %174 = vector.broadcast %28 : vector<1x32xf32> to vector<16x32xf32>
    %175 = arith.addf %173, %174 : vector<16x32xf32>
    %c1 = arith.constant 1 : index
    %c0_65 = arith.constant 0 : index
    %c0_66 = arith.constant 0 : index
    %176 = vector.load %arg4[%c1, %c0_65, %c0_66] : memref<2x32x64xf32, #tpu.memory_space<vmem>>, vector<1x32x64xf32>
    %177 = vector.shape_cast %176 : vector<1x32x64xf32> to vector<32x64xf32>
    %c1_67 = arith.constant 1 : index
    %c0_68 = arith.constant 0 : index
    %c0_69 = arith.constant 0 : index
    %178 = vector.load %arg5[%c1_67, %c0_68, %c0_69] : memref<2x32x32xf32, #tpu.memory_space<vmem>>, vector<1x32x32xf32>
    %179 = vector.shape_cast %178 : vector<1x32x32xf32> to vector<32x32xf32>
    %c1_70 = arith.constant 1 : index
    %c0_71 = arith.constant 0 : index
    %c0_72 = arith.constant 0 : index
    %180 = vector.load %arg6[%c1_70, %c0_71, %c0_72] : memref<2x32x32xf32, #tpu.memory_space<vmem>>, vector<1x32x32xf32>
    %181 = vector.shape_cast %180 : vector<1x32x32xf32> to vector<32x32xf32>
    %c1_73 = arith.constant 1 : index
    %c0_74 = arith.constant 0 : index
    %c0_75 = arith.constant 0 : index
    %182 = vector.load %arg7[%c1_73, %c0_74, %c0_75] : memref<2x32x64xf32, #tpu.memory_space<vmem>>, vector<1x32x64xf32>
    %183 = vector.shape_cast %182 : vector<1x32x64xf32> to vector<32x64xf32>
    %c1_76 = arith.constant 1 : index
    %c0_77 = arith.constant 0 : index
    %c0_78 = arith.constant 0 : index
    %184 = vector.load %arg8[%c1_76, %c0_77, %c0_78] : memref<2x64x32xf32, #tpu.memory_space<vmem>>, vector<1x64x32xf32>
    %185 = vector.shape_cast %184 : vector<1x64x32xf32> to vector<64x32xf32>
    %c1_79 = arith.constant 1 : index
    %c0_80 = arith.constant 0 : index
    %c0_81 = arith.constant 0 : index
    %186 = vector.load %arg9[%c1_79, %c0_80, %c0_81] : memref<2x9x32xf32, #tpu.memory_space<vmem>>, vector<1x9x32xf32>
    %187 = vector.shape_cast %186 : vector<1x9x32xf32> to vector<9x32xf32>
    %c1_82 = arith.constant 1 : index
    %c0_83 = arith.constant 0 : index
    %c0_84 = arith.constant 0 : index
    %188 = vector.load %arg10[%c1_82, %c0_83, %c0_84] : memref<2x1x64xf32, #tpu.memory_space<vmem>>, vector<1x1x64xf32>
    %189 = vector.shape_cast %188 : vector<1x1x64xf32> to vector<1x64xf32>
    %190 = vector.extract_strided_slice %187 {offsets = [0, 0], sizes = [1, 32], strides = [1, 1]} : vector<9x32xf32> to vector<1x32xf32>
    %191 = vector.extract_strided_slice %187 {offsets = [1, 0], sizes = [1, 32], strides = [1, 1]} : vector<9x32xf32> to vector<1x32xf32>
    %192 = vector.extract_strided_slice %187 {offsets = [2, 0], sizes = [1, 32], strides = [1, 1]} : vector<9x32xf32> to vector<1x32xf32>
    %193 = vector.extract_strided_slice %187 {offsets = [3, 0], sizes = [1, 32], strides = [1, 1]} : vector<9x32xf32> to vector<1x32xf32>
    %194 = vector.extract_strided_slice %187 {offsets = [4, 0], sizes = [1, 32], strides = [1, 1]} : vector<9x32xf32> to vector<1x32xf32>
    %195 = vector.extract_strided_slice %187 {offsets = [5, 0], sizes = [1, 32], strides = [1, 1]} : vector<9x32xf32> to vector<1x32xf32>
    %196 = vector.extract_strided_slice %187 {offsets = [6, 0], sizes = [1, 32], strides = [1, 1]} : vector<9x32xf32> to vector<1x32xf32>
    %197 = vector.extract_strided_slice %187 {offsets = [7, 0], sizes = [1, 32], strides = [1, 1]} : vector<9x32xf32> to vector<1x32xf32>
    %198 = vector.extract_strided_slice %187 {offsets = [8, 0], sizes = [1, 32], strides = [1, 1]} : vector<9x32xf32> to vector<1x32xf32>
    %199 = arith.addf %175, %5 : vector<16x32xf32>
    %200 = arith.addf %175, %3 : vector<16x32xf32>
    %cst_85 = arith.constant dense<0.000000e+00> : vector<16x64xf32>
    %201 = tpu.matmul %199, %177, %cst_85 {dimension_numbers = #tpu.dot_dimension_numbers<[1], [0], [0], [1], [0, 0, 1, 1], [], []>} : vector<16x32xf32>, vector<32x64xf32>, vector<16x64xf32> -> vector<16x64xf32>
    %202 = vector.extract_strided_slice %201 {offsets = [0, 0], sizes = [16, 32], strides = [1, 1]} : vector<16x64xf32> to vector<16x32xf32>
    %203 = vector.broadcast %190 : vector<1x32xf32> to vector<16x32xf32>
    %204 = arith.addf %202, %203 : vector<16x32xf32>
    %cst_86 = arith.constant 0.353553385 : f32
    %205 = vector.broadcast %cst_86 : f32 to vector<16x32xf32>
    %206 = arith.mulf %204, %205 : vector<16x32xf32>
    %207 = vector.extract_strided_slice %201 {offsets = [0, 32], sizes = [16, 32], strides = [1, 1]} : vector<16x64xf32> to vector<16x32xf32>
    %208 = vector.broadcast %191 : vector<1x32xf32> to vector<16x32xf32>
    %209 = arith.addf %207, %208 : vector<16x32xf32>
    %cst_87 = arith.constant dense<0.000000e+00> : vector<16x32xf32>
    %210 = tpu.matmul %200, %179, %cst_87 {dimension_numbers = #tpu.dot_dimension_numbers<[1], [0], [0], [1], [0, 0, 1, 1], [], []>} : vector<16x32xf32>, vector<32x32xf32>, vector<16x32xf32> -> vector<16x32xf32>
    %211 = vector.broadcast %192 : vector<1x32xf32> to vector<16x32xf32>
    %212 = arith.addf %210, %211 : vector<16x32xf32>
    %cst_88 = arith.constant 0.000000e+00 : f32
    %213 = vector.broadcast %cst_88 : f32 to vector<16x32xf32>
    %214 = vector.extract_strided_slice %206 {offsets = [0, 0], sizes = [16, 8], strides = [1, 1]} : vector<16x32xf32> to vector<16x8xf32>
    %215 = vector.extract_strided_slice %209 {offsets = [0, 0], sizes = [16, 8], strides = [1, 1]} : vector<16x32xf32> to vector<16x8xf32>
    %216 = vector.extract_strided_slice %212 {offsets = [0, 0], sizes = [16, 8], strides = [1, 1]} : vector<16x32xf32> to vector<16x8xf32>
    %217 = tpu.transpose %215, [1, 0] : vector<16x8xf32> -> vector<8x16xf32>
    %cst_89 = arith.constant dense<0.000000e+00> : vector<16x16xf32>
    %218 = tpu.matmul %214, %217, %cst_89 {dimension_numbers = #tpu.dot_dimension_numbers<[1], [0], [0], [1], [0, 0, 1, 1], [], []>} : vector<16x8xf32>, vector<8x16xf32>, vector<16x16xf32> -> vector<16x16xf32>
    %cst_90 = arith.constant dense<0xFF800000> : vector<16xf32>
    %219 = vector.multi_reduction <maximumf>, %218, %cst_90 [1] : vector<16x16xf32> to vector<16xf32>
    %220 = vector.shape_cast %219 : vector<16xf32> to vector<16x1xf32>
    %221 = vector.broadcast %220 : vector<16x1xf32> to vector<16x16xf32>
    %222 = arith.subf %218, %221 : vector<16x16xf32>
    %223 = math.exp %222 : vector<16x16xf32>
    %cst_91 = arith.constant dense<0.000000e+00> : vector<16xf32>
    %224 = vector.multi_reduction <add>, %223, %cst_91 [1] : vector<16x16xf32> to vector<16xf32>
    %225 = vector.shape_cast %224 : vector<16xf32> to vector<16x1xf32>
    %226 = tpu.reciprocal %225 {approx = true} : vector<16x1xf32> -> vector<16x1xf32>
    %227 = vector.broadcast %226 : vector<16x1xf32> to vector<16x16xf32>
    %228 = arith.mulf %223, %227 : vector<16x16xf32>
    %cst_92 = arith.constant dense<0.000000e+00> : vector<16x8xf32>
    %229 = tpu.matmul %228, %216, %cst_92 {dimension_numbers = #tpu.dot_dimension_numbers<[1], [0], [0], [1], [0, 0, 1, 1], [], []>} : vector<16x16xf32>, vector<16x8xf32>, vector<16x8xf32> -> vector<16x8xf32>
    %230 = vector.extract_strided_slice %181 {offsets = [0, 0], sizes = [8, 32], strides = [1, 1]} : vector<32x32xf32> to vector<8x32xf32>
    %cst_93 = arith.constant dense<0.000000e+00> : vector<16x32xf32>
    %231 = tpu.matmul %229, %230, %cst_93 {dimension_numbers = #tpu.dot_dimension_numbers<[1], [0], [0], [1], [0, 0, 1, 1], [], []>} : vector<16x8xf32>, vector<8x32xf32>, vector<16x32xf32> -> vector<16x32xf32>
    %232 = arith.addf %213, %231 : vector<16x32xf32>
    %233 = vector.extract_strided_slice %206 {offsets = [0, 8], sizes = [16, 8], strides = [1, 1]} : vector<16x32xf32> to vector<16x8xf32>
    %234 = vector.extract_strided_slice %209 {offsets = [0, 8], sizes = [16, 8], strides = [1, 1]} : vector<16x32xf32> to vector<16x8xf32>
    %235 = vector.extract_strided_slice %212 {offsets = [0, 8], sizes = [16, 8], strides = [1, 1]} : vector<16x32xf32> to vector<16x8xf32>
    %236 = tpu.transpose %234, [1, 0] : vector<16x8xf32> -> vector<8x16xf32>
    %cst_94 = arith.constant dense<0.000000e+00> : vector<16x16xf32>
    %237 = tpu.matmul %233, %236, %cst_94 {dimension_numbers = #tpu.dot_dimension_numbers<[1], [0], [0], [1], [0, 0, 1, 1], [], []>} : vector<16x8xf32>, vector<8x16xf32>, vector<16x16xf32> -> vector<16x16xf32>
    %cst_95 = arith.constant dense<0xFF800000> : vector<16xf32>
    %238 = vector.multi_reduction <maximumf>, %237, %cst_95 [1] : vector<16x16xf32> to vector<16xf32>
    %239 = vector.shape_cast %238 : vector<16xf32> to vector<16x1xf32>
    %240 = vector.broadcast %239 : vector<16x1xf32> to vector<16x16xf32>
    %241 = arith.subf %237, %240 : vector<16x16xf32>
    %242 = math.exp %241 : vector<16x16xf32>
    %cst_96 = arith.constant dense<0.000000e+00> : vector<16xf32>
    %243 = vector.multi_reduction <add>, %242, %cst_96 [1] : vector<16x16xf32> to vector<16xf32>
    %244 = vector.shape_cast %243 : vector<16xf32> to vector<16x1xf32>
    %245 = tpu.reciprocal %244 {approx = true} : vector<16x1xf32> -> vector<16x1xf32>
    %246 = vector.broadcast %245 : vector<16x1xf32> to vector<16x16xf32>
    %247 = arith.mulf %242, %246 : vector<16x16xf32>
    %cst_97 = arith.constant dense<0.000000e+00> : vector<16x8xf32>
    %248 = tpu.matmul %247, %235, %cst_97 {dimension_numbers = #tpu.dot_dimension_numbers<[1], [0], [0], [1], [0, 0, 1, 1], [], []>} : vector<16x16xf32>, vector<16x8xf32>, vector<16x8xf32> -> vector<16x8xf32>
    %249 = vector.extract_strided_slice %181 {offsets = [8, 0], sizes = [8, 32], strides = [1, 1]} : vector<32x32xf32> to vector<8x32xf32>
    %cst_98 = arith.constant dense<0.000000e+00> : vector<16x32xf32>
    %250 = tpu.matmul %248, %249, %cst_98 {dimension_numbers = #tpu.dot_dimension_numbers<[1], [0], [0], [1], [0, 0, 1, 1], [], []>} : vector<16x8xf32>, vector<8x32xf32>, vector<16x32xf32> -> vector<16x32xf32>
    %251 = arith.addf %232, %250 : vector<16x32xf32>
    %252 = vector.extract_strided_slice %206 {offsets = [0, 16], sizes = [16, 8], strides = [1, 1]} : vector<16x32xf32> to vector<16x8xf32>
    %253 = vector.extract_strided_slice %209 {offsets = [0, 16], sizes = [16, 8], strides = [1, 1]} : vector<16x32xf32> to vector<16x8xf32>
    %254 = vector.extract_strided_slice %212 {offsets = [0, 16], sizes = [16, 8], strides = [1, 1]} : vector<16x32xf32> to vector<16x8xf32>
    %255 = tpu.transpose %253, [1, 0] : vector<16x8xf32> -> vector<8x16xf32>
    %cst_99 = arith.constant dense<0.000000e+00> : vector<16x16xf32>
    %256 = tpu.matmul %252, %255, %cst_99 {dimension_numbers = #tpu.dot_dimension_numbers<[1], [0], [0], [1], [0, 0, 1, 1], [], []>} : vector<16x8xf32>, vector<8x16xf32>, vector<16x16xf32> -> vector<16x16xf32>
    %cst_100 = arith.constant dense<0xFF800000> : vector<16xf32>
    %257 = vector.multi_reduction <maximumf>, %256, %cst_100 [1] : vector<16x16xf32> to vector<16xf32>
    %258 = vector.shape_cast %257 : vector<16xf32> to vector<16x1xf32>
    %259 = vector.broadcast %258 : vector<16x1xf32> to vector<16x16xf32>
    %260 = arith.subf %256, %259 : vector<16x16xf32>
    %261 = math.exp %260 : vector<16x16xf32>
    %cst_101 = arith.constant dense<0.000000e+00> : vector<16xf32>
    %262 = vector.multi_reduction <add>, %261, %cst_101 [1] : vector<16x16xf32> to vector<16xf32>
    %263 = vector.shape_cast %262 : vector<16xf32> to vector<16x1xf32>
    %264 = tpu.reciprocal %263 {approx = true} : vector<16x1xf32> -> vector<16x1xf32>
    %265 = vector.broadcast %264 : vector<16x1xf32> to vector<16x16xf32>
    %266 = arith.mulf %261, %265 : vector<16x16xf32>
    %cst_102 = arith.constant dense<0.000000e+00> : vector<16x8xf32>
    %267 = tpu.matmul %266, %254, %cst_102 {dimension_numbers = #tpu.dot_dimension_numbers<[1], [0], [0], [1], [0, 0, 1, 1], [], []>} : vector<16x16xf32>, vector<16x8xf32>, vector<16x8xf32> -> vector<16x8xf32>
    %268 = vector.extract_strided_slice %181 {offsets = [16, 0], sizes = [8, 32], strides = [1, 1]} : vector<32x32xf32> to vector<8x32xf32>
    %cst_103 = arith.constant dense<0.000000e+00> : vector<16x32xf32>
    %269 = tpu.matmul %267, %268, %cst_103 {dimension_numbers = #tpu.dot_dimension_numbers<[1], [0], [0], [1], [0, 0, 1, 1], [], []>} : vector<16x8xf32>, vector<8x32xf32>, vector<16x32xf32> -> vector<16x32xf32>
    %270 = arith.addf %251, %269 : vector<16x32xf32>
    %271 = vector.extract_strided_slice %206 {offsets = [0, 24], sizes = [16, 8], strides = [1, 1]} : vector<16x32xf32> to vector<16x8xf32>
    %272 = vector.extract_strided_slice %209 {offsets = [0, 24], sizes = [16, 8], strides = [1, 1]} : vector<16x32xf32> to vector<16x8xf32>
    %273 = vector.extract_strided_slice %212 {offsets = [0, 24], sizes = [16, 8], strides = [1, 1]} : vector<16x32xf32> to vector<16x8xf32>
    %274 = tpu.transpose %272, [1, 0] : vector<16x8xf32> -> vector<8x16xf32>
    %cst_104 = arith.constant dense<0.000000e+00> : vector<16x16xf32>
    %275 = tpu.matmul %271, %274, %cst_104 {dimension_numbers = #tpu.dot_dimension_numbers<[1], [0], [0], [1], [0, 0, 1, 1], [], []>} : vector<16x8xf32>, vector<8x16xf32>, vector<16x16xf32> -> vector<16x16xf32>
    %cst_105 = arith.constant dense<0xFF800000> : vector<16xf32>
    %276 = vector.multi_reduction <maximumf>, %275, %cst_105 [1] : vector<16x16xf32> to vector<16xf32>
    %277 = vector.shape_cast %276 : vector<16xf32> to vector<16x1xf32>
    %278 = vector.broadcast %277 : vector<16x1xf32> to vector<16x16xf32>
    %279 = arith.subf %275, %278 : vector<16x16xf32>
    %280 = math.exp %279 : vector<16x16xf32>
    %cst_106 = arith.constant dense<0.000000e+00> : vector<16xf32>
    %281 = vector.multi_reduction <add>, %280, %cst_106 [1] : vector<16x16xf32> to vector<16xf32>
    %282 = vector.shape_cast %281 : vector<16xf32> to vector<16x1xf32>
    %283 = tpu.reciprocal %282 {approx = true} : vector<16x1xf32> -> vector<16x1xf32>
    %284 = vector.broadcast %283 : vector<16x1xf32> to vector<16x16xf32>
    %285 = arith.mulf %280, %284 : vector<16x16xf32>
    %cst_107 = arith.constant dense<0.000000e+00> : vector<16x8xf32>
    %286 = tpu.matmul %285, %273, %cst_107 {dimension_numbers = #tpu.dot_dimension_numbers<[1], [0], [0], [1], [0, 0, 1, 1], [], []>} : vector<16x16xf32>, vector<16x8xf32>, vector<16x8xf32> -> vector<16x8xf32>
    %287 = vector.extract_strided_slice %181 {offsets = [24, 0], sizes = [8, 32], strides = [1, 1]} : vector<32x32xf32> to vector<8x32xf32>
    %cst_108 = arith.constant dense<0.000000e+00> : vector<16x32xf32>
    %288 = tpu.matmul %286, %287, %cst_108 {dimension_numbers = #tpu.dot_dimension_numbers<[1], [0], [0], [1], [0, 0, 1, 1], [], []>} : vector<16x8xf32>, vector<8x32xf32>, vector<16x32xf32> -> vector<16x32xf32>
    %289 = arith.addf %270, %288 : vector<16x32xf32>
    %290 = vector.broadcast %193 : vector<1x32xf32> to vector<16x32xf32>
    %291 = arith.addf %289, %290 : vector<16x32xf32>
    %292 = arith.addf %200, %291 : vector<16x32xf32>
    %cst_109 = arith.constant dense<0.000000e+00> : vector<16xf32>
    %293 = vector.multi_reduction <add>, %292, %cst_109 [1] : vector<16x32xf32> to vector<16xf32>
    %294 = vector.shape_cast %293 : vector<16xf32> to vector<16x1xf32>
    %cst_110 = arith.constant 3.200000e+01 : f32
    %295 = vector.broadcast %cst_110 : f32 to vector<16x1xf32>
    %296 = arith.divf %294, %295 : vector<16x1xf32>
    %297 = vector.broadcast %296 : vector<16x1xf32> to vector<16x32xf32>
    %298 = arith.subf %292, %297 : vector<16x32xf32>
    %299 = arith.mulf %298, %298 : vector<16x32xf32>
    %cst_111 = arith.constant dense<0.000000e+00> : vector<16xf32>
    %300 = vector.multi_reduction <add>, %299, %cst_111 [1] : vector<16x32xf32> to vector<16xf32>
    %301 = vector.shape_cast %300 : vector<16xf32> to vector<16x1xf32>
    %cst_112 = arith.constant 3.200000e+01 : f32
    %302 = vector.broadcast %cst_112 : f32 to vector<16x1xf32>
    %303 = arith.divf %301, %302 : vector<16x1xf32>
    %304 = vector.broadcast %296 : vector<16x1xf32> to vector<16x32xf32>
    %305 = arith.subf %292, %304 : vector<16x32xf32>
    %cst_113 = arith.constant 9.99999974E-6 : f32
    %306 = vector.broadcast %cst_113 : f32 to vector<16x1xf32>
    %307 = arith.addf %303, %306 : vector<16x1xf32>
    %308 = math.rsqrt %307 : vector<16x1xf32>
    %309 = vector.broadcast %308 : vector<16x1xf32> to vector<16x32xf32>
    %310 = arith.mulf %305, %309 : vector<16x32xf32>
    %311 = vector.broadcast %195 : vector<1x32xf32> to vector<16x32xf32>
    %312 = arith.mulf %310, %311 : vector<16x32xf32>
    %313 = vector.broadcast %196 : vector<1x32xf32> to vector<16x32xf32>
    %314 = arith.addf %312, %313 : vector<16x32xf32>
    %cst_114 = arith.constant dense<0.000000e+00> : vector<16x64xf32>
    %315 = tpu.matmul %314, %183, %cst_114 {dimension_numbers = #tpu.dot_dimension_numbers<[1], [0], [0], [1], [0, 0, 1, 1], [], []>} : vector<16x32xf32>, vector<32x64xf32>, vector<16x64xf32> -> vector<16x64xf32>
    %316 = vector.broadcast %189 : vector<1x64xf32> to vector<16x64xf32>
    %317 = arith.addf %315, %316 : vector<16x64xf32>
    %cst_115 = arith.constant 0.000000e+00 : f32
    %318 = vector.broadcast %cst_115 : f32 to vector<16x64xf32>
    %319 = arith.maximumf %317, %318 : vector<16x64xf32>
    %cst_116 = arith.constant dense<0.000000e+00> : vector<16x32xf32>
    %320 = tpu.matmul %319, %185, %cst_116 {dimension_numbers = #tpu.dot_dimension_numbers<[1], [0], [0], [1], [0, 0, 1, 1], [], []>} : vector<16x64xf32>, vector<64x32xf32>, vector<16x32xf32> -> vector<16x32xf32>
    %321 = vector.broadcast %194 : vector<1x32xf32> to vector<16x32xf32>
    %322 = arith.addf %320, %321 : vector<16x32xf32>
    %323 = arith.addf %314, %322 : vector<16x32xf32>
    %cst_117 = arith.constant dense<0.000000e+00> : vector<16xf32>
    %324 = vector.multi_reduction <add>, %323, %cst_117 [1] : vector<16x32xf32> to vector<16xf32>
    %325 = vector.shape_cast %324 : vector<16xf32> to vector<16x1xf32>
    %cst_118 = arith.constant 3.200000e+01 : f32
    %326 = vector.broadcast %cst_118 : f32 to vector<16x1xf32>
    %327 = arith.divf %325, %326 : vector<16x1xf32>
    %328 = vector.broadcast %327 : vector<16x1xf32> to vector<16x32xf32>
    %329 = arith.subf %323, %328 : vector<16x32xf32>
    %330 = arith.mulf %329, %329 : vector<16x32xf32>
    %cst_119 = arith.constant dense<0.000000e+00> : vector<16xf32>
    %331 = vector.multi_reduction <add>, %330, %cst_119 [1] : vector<16x32xf32> to vector<16xf32>
    %332 = vector.shape_cast %331 : vector<16xf32> to vector<16x1xf32>
    %cst_120 = arith.constant 3.200000e+01 : f32
    %333 = vector.broadcast %cst_120 : f32 to vector<16x1xf32>
    %334 = arith.divf %332, %333 : vector<16x1xf32>
    %335 = vector.broadcast %327 : vector<16x1xf32> to vector<16x32xf32>
    %336 = arith.subf %323, %335 : vector<16x32xf32>
    %cst_121 = arith.constant 9.99999974E-6 : f32
    %337 = vector.broadcast %cst_121 : f32 to vector<16x1xf32>
    %338 = arith.addf %334, %337 : vector<16x1xf32>
    %339 = math.rsqrt %338 : vector<16x1xf32>
    %340 = vector.broadcast %339 : vector<16x1xf32> to vector<16x32xf32>
    %341 = arith.mulf %336, %340 : vector<16x32xf32>
    %342 = vector.broadcast %197 : vector<1x32xf32> to vector<16x32xf32>
    %343 = arith.mulf %341, %342 : vector<16x32xf32>
    %344 = vector.broadcast %198 : vector<1x32xf32> to vector<16x32xf32>
    %345 = arith.addf %343, %344 : vector<16x32xf32>
    %c0_122 = arith.constant 0 : index
    %c0_123 = arith.constant 0 : index
    %346 = vector.load %arg11[%c0_122, %c0_123] : memref<2x32xf32, #tpu.memory_space<vmem>>, vector<2x32xf32>
    %347 = vector.extract_strided_slice %346 {offsets = [0, 0], sizes = [1, 32], strides = [1, 1]} : vector<2x32xf32> to vector<1x32xf32>
    %348 = vector.extract_strided_slice %346 {offsets = [1, 0], sizes = [1, 32], strides = [1, 1]} : vector<2x32xf32> to vector<1x32xf32>
    %cst_124 = arith.constant dense<0.000000e+00> : vector<16xf32>
    %349 = vector.multi_reduction <add>, %345, %cst_124 [1] : vector<16x32xf32> to vector<16xf32>
    %350 = vector.shape_cast %349 : vector<16xf32> to vector<16x1xf32>
    %cst_125 = arith.constant 3.200000e+01 : f32
    %351 = vector.broadcast %cst_125 : f32 to vector<16x1xf32>
    %352 = arith.divf %350, %351 : vector<16x1xf32>
    %353 = vector.broadcast %352 : vector<16x1xf32> to vector<16x32xf32>
    %354 = arith.subf %345, %353 : vector<16x32xf32>
    %355 = arith.mulf %354, %354 : vector<16x32xf32>
    %cst_126 = arith.constant dense<0.000000e+00> : vector<16xf32>
    %356 = vector.multi_reduction <add>, %355, %cst_126 [1] : vector<16x32xf32> to vector<16xf32>
    %357 = vector.shape_cast %356 : vector<16xf32> to vector<16x1xf32>
    %cst_127 = arith.constant 3.200000e+01 : f32
    %358 = vector.broadcast %cst_127 : f32 to vector<16x1xf32>
    %359 = arith.divf %357, %358 : vector<16x1xf32>
    %360 = vector.broadcast %352 : vector<16x1xf32> to vector<16x32xf32>
    %361 = arith.subf %345, %360 : vector<16x32xf32>
    %cst_128 = arith.constant 9.99999974E-6 : f32
    %362 = vector.broadcast %cst_128 : f32 to vector<16x1xf32>
    %363 = arith.addf %359, %362 : vector<16x1xf32>
    %364 = math.rsqrt %363 : vector<16x1xf32>
    %365 = vector.broadcast %364 : vector<16x1xf32> to vector<16x32xf32>
    %366 = arith.mulf %361, %365 : vector<16x32xf32>
    %367 = vector.broadcast %347 : vector<1x32xf32> to vector<16x32xf32>
    %368 = arith.mulf %366, %367 : vector<16x32xf32>
    %369 = vector.broadcast %348 : vector<1x32xf32> to vector<16x32xf32>
    %370 = arith.addf %368, %369 : vector<16x32xf32>
    %c0_129 = arith.constant 0 : index
    %c0_130 = arith.constant 0 : index
    %c0_131 = arith.constant 0 : index
    %371 = vector.load %arg12[%c0_129, %c0_130, %c0_131] : memref<1x16x32xf32, #tpu.memory_space<vmem>>, vector<1x16x32xf32>
    %372 = vector.shape_cast %371 : vector<1x16x32xf32> to vector<16x32xf32>
    %373 = vector.shape_cast %370 : vector<16x32xf32> to vector<1x16x32xf32>
    tpu.vector_store %arg12[%c0_129, %c0_130, %c0_131], %373 {strides = array<i32>} : memref<1x16x32xf32, #tpu.memory_space<vmem>>, vector<1x16x32xf32>,
    return
  }
  func.func @transform_0(%arg0: i32) -> (i32, i32, i32) {
    %c0_i32 = arith.constant 0 : i32
    %c0_i32_0 = arith.constant 0 : i32
    %c0_i32_1 = arith.constant 0 : i32
    return %arg0, %c0_i32, %c0_i32_0 : i32, i32, i32
  }
  func.func @transform_1(%arg0: i32) -> (i32, i32, i32) {
    %c0_i32 = arith.constant 0 : i32
    %c0_i32_0 = arith.constant 0 : i32
    %c0_i32_1 = arith.constant 0 : i32
    return %arg0, %c0_i32, %c0_i32_0 : i32, i32, i32
  }
  func.func @transform_2(%arg0: i32) -> (i32, i32, i32) {
    %c0_i32 = arith.constant 0 : i32
    %c0_i32_0 = arith.constant 0 : i32
    %c0_i32_1 = arith.constant 0 : i32
    return %arg0, %c0_i32, %c0_i32_0 : i32, i32, i32
  }
  func.func @transform_3(%arg0: i32) -> (i32, i32, i32) {
    %c0_i32 = arith.constant 0 : i32
    %c0_i32_0 = arith.constant 0 : i32
    %c0_i32_1 = arith.constant 0 : i32
    %c0_i32_2 = arith.constant 0 : i32
    return %c0_i32, %c0_i32_0, %c0_i32_1 : i32, i32, i32
  }
  func.func @transform_4(%arg0: i32) -> (i32, i32, i32) {
    %c0_i32 = arith.constant 0 : i32
    %c0_i32_0 = arith.constant 0 : i32
    %c0_i32_1 = arith.constant 0 : i32
    %c0_i32_2 = arith.constant 0 : i32
    return %c0_i32, %c0_i32_0, %c0_i32_1 : i32, i32, i32
  }
  func.func @transform_5(%arg0: i32) -> (i32, i32, i32) {
    %c0_i32 = arith.constant 0 : i32
    %c0_i32_0 = arith.constant 0 : i32
    %c0_i32_1 = arith.constant 0 : i32
    %c0_i32_2 = arith.constant 0 : i32
    return %c0_i32, %c0_i32_0, %c0_i32_1 : i32, i32, i32
  }
  func.func @transform_6(%arg0: i32) -> (i32, i32, i32) {
    %c0_i32 = arith.constant 0 : i32
    %c0_i32_0 = arith.constant 0 : i32
    %c0_i32_1 = arith.constant 0 : i32
    %c0_i32_2 = arith.constant 0 : i32
    return %c0_i32, %c0_i32_0, %c0_i32_1 : i32, i32, i32
  }
  func.func @transform_7(%arg0: i32) -> (i32, i32, i32) {
    %c0_i32 = arith.constant 0 : i32
    %c0_i32_0 = arith.constant 0 : i32
    %c0_i32_1 = arith.constant 0 : i32
    %c0_i32_2 = arith.constant 0 : i32
    return %c0_i32, %c0_i32_0, %c0_i32_1 : i32, i32, i32
  }
  func.func @transform_8(%arg0: i32) -> (i32, i32, i32) {
    %c0_i32 = arith.constant 0 : i32
    %c0_i32_0 = arith.constant 0 : i32
    %c0_i32_1 = arith.constant 0 : i32
    %c0_i32_2 = arith.constant 0 : i32
    return %c0_i32, %c0_i32_0, %c0_i32_1 : i32, i32, i32
  }
  func.func @transform_9(%arg0: i32) -> (i32, i32, i32) {
    %c0_i32 = arith.constant 0 : i32
    %c0_i32_0 = arith.constant 0 : i32
    %c0_i32_1 = arith.constant 0 : i32
    %c0_i32_2 = arith.constant 0 : i32
    return %c0_i32, %c0_i32_0, %c0_i32_1 : i32, i32, i32
  }
  func.func @transform_10(%arg0: i32) -> (i32, i32) {
    %c0_i32 = arith.constant 0 : i32
    %c0_i32_0 = arith.constant 0 : i32
    %c0_i32_1 = arith.constant 0 : i32
    return %c0_i32, %c0_i32_0 : i32, i32
  }
  func.func @transform_11(%arg0: i32) -> (i32, i32, i32) {
    %c0_i32 = arith.constant 0 : i32
    %c0_i32_0 = arith.constant 0 : i32
    %c0_i32_1 = arith.constant 0 : i32
    return %arg0, %c0_i32, %c0_i32_0 : i32, i32, i32
  }
}

</mosaic_0001>

<bundles_post_ra>
// kernel: tpu_custom_call.1
= control target key start
LH: loop header
LB: loop body
LE: loop exit
PB: predicated region body
PF: predicated region fallthrough
CT: control target
= control target key end

     0   :  { %s5552_s0 = inlined_call_operand.vmem [shape: f32[2,16,32], index: 0, kind: input, shape index: {}]   ;;  %s5553_s1 = inlined_call_operand.hbm [shape: f32[2,16,32], index: 1, kind: input, shape index: {}]   ;;  %s5554_s2 = inlined_call_operand.hbm [shape: f32[2,16,32], index: 2, kind: input, shape index: {}]   ;;  %s5555_s3 = inlined_call_operand.vmem [shape: f32[2,32,64], index: 3, kind: input, shape index: {}]   ;;  %s5556_s4 = inlined_call_operand.vmem [shape: f32[2,32,32], index: 4, kind: input, shape index: {}]   ;;  %s5557_s5 = inlined_call_operand.vmem [shape: f32[2,32,32], index: 5, kind: input, shape index: {}]   ;;  %s5558_s6 = inlined_call_operand.hbm [shape: f32[2,32,64], index: 6, kind: input, shape index: {}]   ;;  %s5559_s7 = inlined_call_operand.vmem [shape: f32[2,64,32], index: 7, kind: input, shape index: {}]   ;;  %s5560_s8 = inlined_call_operand.vmem [shape: f32[2,9,32], index: 8, kind: input, shape index: {}]   ;;  %s5561_s9 = inlined_call_operand.vmem [shape: f32[2,1,64], index: 9, kind: input, shape index: {}]   ;;  %s5562_s10 = inlined_call_operand.vmem [shape: f32[2,32], index: 10, kind: input, shape index: {}]   ;;  %s5563_s11 = inlined_call_operand.hbm [shape: f32[2,16,32], index: 11, kind: output, shape index: {}]  }
   0x1   :  { %5579 = sst [smem:[#allocation19_spill]] %s5553_s1 }
   0x2   :  { %5580 = sst [smem:[#allocation20_spill]] %s5558_s6 }
   0x3   :  { %5581 = sst [smem:[#allocation21_spill]] %s5562_s10 }
   0x4   :  { %5582 = sst [smem:[#allocation22_spill]] %s5563_s11 }
   0x5   :  { %16 = vsyncpa [#allocation3], 0 }
   0x6   :  { %18 = vsyncpa [#allocation3 + $0x1], 0 }
   0x7   :  { %19 = vsyncpa [#allocation6], 0 }
   0x8   :  { %21 = vsyncpa [#allocation6 + $0x1], 0 }
   0x9   :  { %22 = vsyncpa [#allocation4], 0 }
   0xa   :  { %24 = vsyncpa [#allocation4 + $0x1], 0  ;;  %s4790_s17 = smov 0   ;;  %s4792_s18 = smov 0  }
   0xb   :  { %s4794_s19 = smov 0   ;;  %s4796_s20 = smov 0  }
   0xc LB: > { %5583 = sst [smem:[#allocation13_spill]] %s4700_s17  ;;  %s4811_s21 = sadd.s32 4294967295, %s4712_s20   ;;  %s4712_s20 = sphi %s4796_s20, %s5611_s20   ;;  %s4708_s19 = sphi %s4794_s19, %s5613_s19   ;;  %s4704_s18 = sphi %s4792_s18, %s5615_s18   ;;  %s4700_s17 = sphi %s4790_s17, %s5614_s17  }
   0xd   : > { %5584 = sst [smem:[#allocation14_spill]] %s4708_s19  ;;  %s3867_s22 = sadd.s32 4294967294, %s4712_s20  }
   0xe   : > { %p76_p0 = scmp.ne.s32.totalorder %s4704_s18, %s4700_s17  ;;  %p5576_p1 = scmp.eq.s32.totalorder %s4811_s21, 0 }
   0xf   : > { %p300_p3 = scmp.eq.s32.totalorder %s3867_s22, 1  ;;  %p3868_p5 = scmp.ge.s32.totalorder %s4712_s20, 1 }
  0x10   : > { %p4820_p4 = por %p5576_p1, %p76_p0  ;;  %p307_p7 = scmp.lt.s32.totalorder %s4712_s20, 3 }
  0x11   : > { %p4825_p6 = por %p300_p3, %p76_p0  ;;  %s4714_s26 = smov [#allocation7]  }
  0x12   : > { %s5585_s23 = scalar_select %p4820_p4, 1, 0 }
  0x13   : > { %s5586_s24 = scalar_select %p4825_p6, 1, 0 }
  0x14   : > { %p4830_p8 = pnand %p3868_p5, %p307_p7  ;;  %s328_s27 = sshll.u32 %s4714_s26, 4  ;;  %s329_s27 = int_to_ptr.vmem [resolvable:$true] %s328_s27 }
  0x15   : > { %5587 = sst [smem:[#allocation15_spill]] %s5586_s24  ;;  %s4844_s29 = sadd.s32 1, %s4712_s20  }
  0x16   : > { %p4410_p9 = pneg %p4830_p8  ;;  %5590 = sst [smem:[#allocation16_spill]] %s4844_s29 }
  0x17   : > { %s63_s30 = sadd.s32 1, %s4708_s19  ;;  %s60_s12 = ssub.s32 %s4712_s20, %s4844_s29 }
  0x18   : > { %p4839_p11 = pnand %p4410_p9, %p5576_p1  ;;  %s4569_s13 = scalar_lea.vmem %s329_s27, 1024 }
  0x19   : > { %p4570_p13 = scmp.ne.s32.totalorder %s329_s27, %s4569_s13  ;;  %p4577_p5 = scmp.lt.s32.totalorder %s329_s27, %s329_s27 }
  0x1a   : > { %p4560_p12 = pneg %p4839_p11  ;;  %p4578_p7 = scmp.lt.s32.totalorder %s4569_s13, %s4569_s13 }
  0x1c   : > { %p4572_p0 = pnand %p4570_p13, %p4560_p12  ;;  %p4579_p10 = por %p4578_p7, %p4577_p5 }
  0x1e   : > { %p4573_p3 = pneg %p4572_p0 }
  0x20   : > { %p4580_p2 = pnand %p4579_p10, %p4573_p3 }
  0x22   : > { %4583 = shalt.err (!%p4580_p2)
}
  0x23   : > { %s5569_s14 = smov 128   ;;  %s5571_s15 = smov 8  }
  0x24   : > { %s5591_s6 = sld [smem:[#allocation20_spill]]  ;;  %p61_p2 = scmp.eq.s32.totalorder %s60_s12, 0 }
  0x25   : > { %p70_p9 = scmp.ne.s32.totalorder %s4708_s19, %s4704_s18  ;;  %p71_p10 = scmp.eq.s32.totalorder %s4712_s20, 0 }
  0x26   : > { %p4426_p12 = scmp.lt.s32.totalorder %s4712_s20, 2  ;;  %p5593_p0 = scmp.eq.s32.totalorder %s4811_s21, 1 }
  0x27   : > { %s4864_s26 = scalar_select %p61_p2, %s4708_s19, %s63_s30  }
  0x28   : > { %p72_p13 = por %p71_p10, %p70_p9  ;;  %p4868_p3 = por %p5593_p0, %p70_p9 }
  0x29   : > { %5592 = sst [smem:[#allocation17_spill]] %s4864_s26  ;;  %s362_s28 = sand.u32 1, %s4708_s19  }
  0x2a   : > { %4413 = dma.hbm_to_vmem [thread:$0]  (!%p4839_p11), %s5591_s6, 1024, %s329_s27, [#allocation6], %s5569_s14, %s5569_s14, %s5571_s15  }
  0x2b   : > { %s5594_s13 = scalar_select %p4868_p3, 1, 0 }
  0x2c   : > { %s3996_s29 = sshll.u32 %s4712_s20, 8  ;;  %s4874_s24 = sshll.u32 %s362_s28, 4 }
  0x2d   : > { %5595 = sst [smem:[#allocation18_spill]] %s5594_s13  ;;  %s366_s30 = scalar_lea.vmem [#allocation2], %s4874_s24 }
  0x2e   : > { %s5596_s1 = sld [smem:[#allocation19_spill]]  ;;  %s373_s12 = sshll.u32 %s366_s30, 4  ;;  %s4886_s12 = int_to_ptr.vmem [resolvable:$true] %s373_s12 }
  0x2f   : > { %p4882_p11 = pnand %p4426_p12, %p72_p13  ;;  %s4891_s11 = scalar_lea.hbm %s5554_s2, %s3996_s29 }
  0x30   : > { %s4893_s17 = scalar_lea.sflag [#allocation3], %s362_s28 }
  0x31   : > { %p4586_p7 = pneg %p4882_p11 }
  0x34   : > { %s4879_s27 = scalar_lea.hbm %s5596_s1, %s3996_s29  ;;  %s4589_s26 = scalar_lea.hbm %s5596_s1, 512 }
  0x35   : > { %s4584_s15 = scalar_lea.hbm %s4879_s27, 256  ;;  %p4590_p10 = scmp.lt.s32.totalorder %s4879_s27, %s5596_s1 }
  0x36   : > { %p4585_p5 = scmp.ne.s32.totalorder %s4879_s27, %s4584_s15  ;;  %p4591_p12 = scmp.lt.s32.totalorder %s4589_s26, %s4584_s15 }
  0x38   : > { %p4587_p2 = pnand %p4586_p7, %p4585_p5  ;;  %p4592_p13 = por %p4591_p12, %p4590_p10 }
  0x3a   : > { %p4588_p9 = pneg %p4587_p2 }
  0x3c   : > { %p4593_p0 = pnand %p4592_p13, %p4588_p9 }
  0x3e   : > { %4596 = shalt.err (!%p4593_p0)
}
  0x3f   : > { %s4597_s29 = scalar_lea.vmem %s4886_s12, 256  ;;  %s4717_s6 = smov [#allocation2]  }
  0x40   : > { %p4598_p1 = scmp.ne.s32.totalorder %s4886_s12, %s4597_s29  ;;  %s4602_s14 = sshll.u32 %s4717_s6, 4  ;;  %s4603_s14 = int_to_ptr.vmem [resolvable:$false] %s4602_s14 }
  0x41   : > { %s4604_s28 = scalar_lea.vmem %s4603_s14, 512  ;;  %p4605_p6 = scmp.lt.s32.totalorder %s4886_s12, %s4603_s14 }
  0x42   : > { %p4600_p5 = pnand %p4598_p1, %p4586_p7  ;;  %p4606_p3 = scmp.lt.s32.totalorder %s4604_s28, %s4597_s29 }
  0x44   : > { %p4601_p2 = pneg %p4600_p5  ;;  %p4607_p4 = por %p4606_p3, %p4605_p6 }
  0x46   : > { %p4608_p10 = pnand %p4607_p4, %p4601_p2 }
  0x48   : > { %4611 = shalt.err (!%p4608_p10)
}
  0x49   : > { %s5598_s19 = smov 8   ;;  %s5599_s15 = smov 128  }
  0x4a   : > { %4417 = dma.hbm_to_vmem [thread:$0]  (!%p4882_p11), %s4879_s27, 256, %s4886_s12, %s4893_s17, %s5599_s15, %s5599_s15, %s5598_s19  }
  0x4b   : > { %s387_s26 = scalar_lea.vmem [#allocation5], %s4874_s24  ;;  %s383_s22 = sand.u32 1, %s4712_s20  }
  0x4c   : > { %s394_s13 = sshll.u32 %s387_s26, 4  ;;  %s384_s30 = scalar_lea.sflag [#allocation6], %s383_s22  ;;  %s4925_s13 = int_to_ptr.vmem [resolvable:$true] %s394_s13 }
  0x4d   : > { %s4612_s29 = scalar_lea.hbm %s4891_s11, 256  ;;  %s4617_s28 = scalar_lea.hbm %s5554_s2, 512 }
  0x4e   : > { %p4613_p1 = scmp.ne.s32.totalorder %s4891_s11, %s4612_s29  ;;  %p4618_p3 = scmp.lt.s32.totalorder %s4891_s11, %s5554_s2 }
  0x4f   : > { %p4619_p9 = scmp.lt.s32.totalorder %s4617_s28, %s4612_s29 }
  0x50   : > { %p4615_p4 = pnand %p4613_p1, %p4586_p7 }
  0x51   : > { %p4620_p12 = por %p4619_p9, %p4618_p3 }
  0x52   : > { %p4616_p6 = pneg %p4615_p4 }
  0x54   : > { %p4621_p13 = pnand %p4620_p12, %p4616_p6 }
  0x56   : > { %4624 = shalt.err (!%p4621_p13)
}
  0x57   : > { %s4625_s24 = scalar_lea.vmem %s4925_s13, 256  ;;  %s4718_s27 = smov [#allocation5]  }
  0x58   : > { %p4626_p0 = scmp.ne.s32.totalorder %s4925_s13, %s4625_s24  ;;  %s4630_s12 = sshll.u32 %s4718_s27, 4  ;;  %s4631_s12 = int_to_ptr.vmem [resolvable:$false] %s4630_s12 }
  0x59   : > { %s4632_s17 = scalar_lea.vmem %s4631_s12, 512  ;;  %p4633_p10 = scmp.lt.s32.totalorder %s4925_s13, %s4631_s12 }
  0x5a   : > { %p4628_p5 = pnand %p4626_p0, %p4586_p7  ;;  %p4634_p1 = scmp.lt.s32.totalorder %s4632_s17, %s4625_s24 }
  0x5c   : > { %p4629_p2 = pneg %p4628_p5  ;;  %p4635_p4 = por %p4634_p1, %p4633_p10 }
  0x5e   : > { %p4636_p3 = pnand %p4635_p4, %p4629_p2 }
  0x60   : > { %4639 = shalt.err (!%p4636_p3)
}
  0x61   : > { %4420 = dma.hbm_to_vmem [thread:$0]  (!%p4882_p11), %s4891_s11, 256, %s4925_s13, %s384_s30, %s5599_s15, %s5599_s15, %s5598_s19  }
  0x62   : > { %406 = sbr.rel (%p4830_p8) target bundleno = 6785 (0x1a81), region = 64  ;;  %s4955_s1 = sand.u32 (!%p4830_p8), 1, %s4704_s18  }
  0x63   : > { %s4958_s10 = sshll.u32 (!%p4830_p8), %s4955_s1, 4  ;;  %s409_s26 = scalar_lea.sflag (!%p4830_p8), [#allocation3], %s4955_s1 }
  0x64   : > { %s412_s16 = scalar_lea.vmem (!%p4830_p8), [#allocation2], %s4958_s10  ;;  %p5600_p7 = scmp.ne.s32.totalorder (!%p4830_p8), %s5585_s23, 0 }
  0x67   : > { %4683 = dma.done.wait (%p5600_p7), %s409_s26, 256  }
  0x68   : > { %4685 = vsyncadd (%p5600_p7), %s409_s26, 4294967040  ;;  %s417_s25 = sand.u32 1, %s4811_s21   ;;  %s421_s19 = scalar_lea.vmem [#allocation5], %s4958_s10 }
  0x69   : > { %s418_s11 = scalar_lea.sflag [#allocation6], %s417_s25 }
  0x6a   : > { %4687 = dma.done.wait (%p5600_p7), %s418_s11, 256  }
  0x6b   : > { %4689 = vsyncadd (%p5600_p7), %s418_s11, 4294967040  ;;  %p5601_p8 = scmp.eq.s32.totalorder %s4811_s21, 0 }
  0x6d   : > { %4691 = dma.done.wait (%p5601_p8), [#allocation6], 1024   ;;  %p5602_p11 = pmov %p5601_p8 }
  0x6e   : > { %p474_p6 = scmp.lt.s32.totalorder %s4811_s21, 1  ;;  %v598_v0 = vlaneseq  ;;  %v488_v2 = vld [vmem:[%s5555_s3 + $0x18] sm:$0xff]  ;;  %v487_v3 = vld [vmem:[%s5555_s3 + $0x10] sm:$0xff]  ;;  %v486_v5 = vld [vmem:[%s5555_s3 + $0x8] sm:$0xff]  ;;  %vm516_vm0 = vcmask 261120   ;;  %s4719_s11 = smov 32  }
  0x6f   : > { %4693 = vsyncadd (%p5602_p11), [#allocation6], 4294966272  ;;  %4144 = vmatprep.subr.mxu0 %v488_v2  ;;  %v4995_v8 = vld [vmem:[%s421_s19] sm:$0xff]  ;;  %v4997_v9 = vld [vmem:[%s421_s19 + $0x8] sm:$0xff]  ;;  %vm707_vm1 = vcmask 64512   ;;  %s4721_s14 = smov 88  }
  0x70   : > { %s475_s15 = scalar_select %p474_p6, %s4811_s21, 1  ;;  %v4978_v1 = vshrl.u32 %v598_v0, 7  ;;  %4145 = vmatpush3.msra.mxu0 %v488_v2  ;;  %v5003_v11 = vld [vmem:[%s5560_s8] sm:$0xff]  ;;  %v492_v15 = vld [vmem:[%s5556_s4 + $0x18] sm:$0xff]  ;;  %v491_v16 = vld [vmem:[%s5556_s4 + $0x10] sm:$0xff]  ;;  %vm793_vm2 = vcmask 130048  }
  0x71   : > { %4146 = vmatprep.subr.mxu0 %v487_v3  ;;  %v485_v12 = vld [vmem:[%s5555_s3] sm:$0xff]  ;;  %4155 = vmatprep.subr.mxu1 %v492_v15  ;;  %v5022_v17 = vld [vmem:[%s412_s16 + $0x8] sm:$0xff]  ;;  %s4722_s28 = smov 120   ;;  %s4723_s24 = smov 80   ;;  %vm1967_vm3 = vcmask 523264  }
  0x72   : > { %s3998_s13 = sshll.u32 %s475_s15, 4  ;;  %v4990_v4 = vsub.s32 1, %v4978_v1  ;;  %4147 = vmatpush3.msra.mxu0 %v487_v3  ;;  %4156 = vmatpush3.msra.mxu1 %v492_v15  ;;  %v490_v18 = vld [vmem:[%s5556_s4 + $0x8] sm:$0xff]  ;;  %v5032_v20 = vld [vmem:[%s412_s16] sm:$0xff]  ;;  %v5045_v23 = vsub.s32 0, %v4978_v1  ;;  %s4720_s16 = smov 96  }
  0x73   : > { %s478_s29 = scalar_lea.vmem %s5552_s0, %s3998_s13  ;;  %4148 = vmatprep.subr.mxu0 %v486_v5  ;;  %4157 = vmatprep.subr.mxu1 %v491_v16  ;;  %v489_v21 = vld [vmem:[%s5556_s4] sm:$0xff]  ;;  %v618_v40 = vsub.s32 2, %v4978_v1  ;;  %s4724_s27 = smov 112  }
  0x74   : > { %v479_v6 = vld [vmem:[%s478_s29] sm:$0xff]  ;;  %v480_v7 = vld [vmem:[%s478_s29 + $0x8] sm:$0xff]  ;;  %v609_v13 = vrot.slane %v5003_v11, %v4990_v4  ;;  %4149 = vmatpush3.msra.mxu0 %v486_v5  ;;  %4158 = vmatpush3.msra.mxu1 %v491_v16  ;;  %v601_v26 = vrot.slane %v5003_v11, %v5045_v23  ;;  %s4725_s12 = smov 72   ;;  %s4726_s17 = smov 104  }
  0x75   : > { %v512_v10 = vadd.f32 %v4995_v8, %v479_v6  ;;  %v513_v14 = vadd.f32 %v4997_v9, %v480_v7  ;;  %4150 = vmatprep.subr.mxu0 %v485_v12  ;;  %v5028_v19 = vadd.f32 %v5022_v17, %v480_v7  ;;  %4159 = vmatprep.subr.mxu1 %v490_v18  ;;  %s5604_s26 = sld [smem:[#allocation18_spill]]  ;;  %s3999_s25 = sshll.u32 %s4811_s21, 8 }
  0x76   : > { %611 = vrot.lane.b32.xlu0 %v609_v13, %s4719_s11  ;;  %4151 = vmatpush3.msra.mxu0 %v485_v12  ;;  %v5038_v22 = vadd.f32 %v5032_v20, %v479_v6  ;;  %v619_v41 = vrot.slane %v5003_v11, %v618_v40  ;;  %s473_s19 = scalar_lea.vmem [#allocation8], %s4958_s10  ;;  %s3737_s21 = scalar_lea.sflag [#allocation4], %s4955_s1 }
  0x77   : > { %4152 = vmatprep.mubr.msk.f32.mxu0 %vm516_vm0, %v512_v10  ;;  %4160 = vmatpush3.msra.mxu1 %v490_v18  ;;  %s3750_s15 = sshll.u32 %s473_s19, 4  ;;  %s5507_s15 = int_to_ptr.vmem [resolvable:$true] %s3750_s15 }
  0x78   : > { %4153 = vmatmul.mubr.msk.f32.vlgmr.msra.gmra.mxu0 %vm516_vm0, %v513_v14  ;;  %4161 = vmatprep.subr.mxu1 %v489_v21  ;;  %s4640_s10 = scalar_lea.vmem %s5507_s15, 256 }
  0x79   : > { %4162 = vmatpush3.msra.mxu1 %v489_v21  ;;  %4163 = vmatprep.mubr.msk.f32.mxu1 %vm516_vm0, %v5038_v22  ;;  %p4641_p9 = scmp.ne.s32.totalorder %s5507_s15, %s4640_s10 }
  0x7a   : > { %4164 = vmatmul.mubr.msk.f32.vlgmr.msra.gmra.mxu1 %vm516_vm0, %v5028_v19 }
  0x7b   : > { %p5606_p12 = scmp.ne.s32.totalorder %s5604_s26, 0 }
  0x7d   : > { %p4642_p13 = pnand %p4641_p9, %p5606_p12 }
  0x7f   : > { %p4643_p0 = pneg %p4642_p13 }
  0xe8   : > { %v612_v24 = vpop.permute.xlu0 %611 }
 0x138   : > { %v4154_v25 = vpop.f32.mrf.mxu0 }
 0x139   : > { %v5049_v27 = vadd.f32 %v4154_v25, %v612_v24  ;;  %v603_v31 = vadd.f32 %v4154_v25, %v601_v26 }
 0x13a   : > { %v589_v28 = vpop.f32.mrf.mxu0  ;;  %v4165_v42 = vpop.f32.mrf.mxu1 }
 0x13b   : > { %v602_v29 = vadd.f32 %v601_v26, %v589_v28  ;;  %v5051_v30 = vadd.f32 %v612_v24, %v589_v28  ;;  %705 = vrot.lane.b32.xlu0 %v5049_v27, %s4720_s16  ;;  %v5063_v33 = vmul.f32 0.35355338, %v603_v31  ;;  %v5087_v43 = vadd.f32 %v4165_v42, %v619_v41  ;;  %v494_v31 = vld [vmem:[%s5557_s5 + $0x8] sm:$0xff] }
 0x13c   : > { %v692_v44 = vpop.f32.mrf.mxu1 }
 0x13d   : > { %v5055_v32 = vmul.f32 0.35355338, %v602_v29  ;;  %703 = vrot.lane.b32.xlu1 %v5051_v30, %s4720_s16  ;;  %v5089_v45 = vadd.f32 %v692_v44, %v619_v41 }
 0x13f   : > { %901 = vrot.lane.b32.xlu0 %v5051_v30, %s4721_s14  ;;  %4170 = vmatprep.mubr.msk.f32.mxu0 %vm707_vm1, %v5055_v32 }
 0x141   : > { %903 = vrot.lane.b32.xlu1 %v5049_v27, %s4721_s14 }
 0x143   : > { %899 = vrot.lane.b32.xlu0 %v5063_v33, %s4722_s28 }
 0x145   : > { %897 = vrot.lane.b32.xlu1 %v5055_v32, %s4722_s28 }
 0x1ad   : > { %v706_v34 = vpop.permute.xlu0 %705 }
 0x1ae   : > { %4166 = vmatprep.subr.msk.mxu0 %vm707_vm1, %v706_v34 }
 0x1af   : > { %4167 = vmatpush3.xpose.msk.msra.mxu0 %vm707_vm1, %v706_v34  ;;  %v704_v35 = vpop.permute.xlu1 %703 }
 0x1b0   : > { %4168 = vmatprep.subr.msk.mxu0 %vm707_vm1, %v704_v35 }
 0x1b1   : > { %v902_v37 = vpop.permute.xlu0 %901 }
 0x1b3   : > { %4169 = vmatpush3.xpose.msk.msra.mxu0 %vm707_vm1, %v704_v35  ;;  %v904_v36 = vpop.permute.xlu1 %903 }
 0x1b4   : > { %4180 = vmatprep.subr.msk.mxu1 %vm707_vm1, %v904_v36  ;;  %4173 = vmatprep.subr.mxu0 %v5087_v43 }
 0x1b5   : > { %4181 = vmatpush3.xpose.msk.msra.mxu1 %vm707_vm1, %v904_v36  ;;  %v900_v39 = vpop.permute.xlu0 %899  ;;  %v493_v36 = vld [vmem:[%s5557_s5] sm:$0xff] }
 0x1b6   : > { %4171 = vmatmul.mubr.msk.f32.vlgmr.msra.gmra.mxu0 %vm707_vm1, %v5063_v33  ;;  %4182 = vmatprep.subr.msk.mxu1 %vm707_vm1, %v902_v37 }
 0x1b7   : > { %v898_v38 = vpop.permute.xlu1 %897  ;;  %4174 = vmatpush3.msra.mxu0 %v5087_v43 }
 0x1b8   : > { %4184 = vmatprep.mubr.msk.f32.mxu1 %vm707_vm1, %v898_v38  ;;  %4175 = vmatprep.subr.mxu0 %v5089_v45 }
 0x1b9   : > { %4183 = vmatpush3.xpose.msk.msra.mxu1 %vm707_vm1, %v902_v37  ;;  %4176 = vmatpush3.msra.mxu0 %v5089_v45 }
 0x1ba   : > { %4199 = vmatprep.subr.mxu1 %v493_v36 }
 0x1bc   : > { %4185 = vmatmul.mubr.msk.f32.vlgmr.msra.gmra.mxu1 %vm707_vm1, %v900_v39 }
 0x1bd   : > { %4200 = vmatpush3.msra.mxu1 %v493_v36 }
 0x276   : > { %v4172_v46 = vpop.f32.mrf.mxu0 }
 0x277   : > { %v797_v47 = vsel %vm793_vm2, %v4172_v46, -inf }
 0x278   : > { %798 = vmax.xlane.f32.xlu0 %v797_v47  ;;  %v784_v48 = vpop.f32.mrf.mxu0 }
 0x279   : > { %v794_v49 = vsel %vm793_vm2, %v784_v48, -inf }
 0x27a   : > { %795 = vmax.xlane.f32.xlu1 %v794_v49 }
 0x27c   : > { %v4186_v50 = vpop.f32.mrf.mxu1 }
 0x27d   : > { %v991_v51 = vsel %vm793_vm2, %v4186_v50, -inf }
 0x27e   : > { %v979_v52 = vpop.f32.mrf.mxu1  ;;  %992 = vmax.xlane.f32.xlu1 %v991_v51 }
 0x27f   : > { %v988_v53 = vsel %vm793_vm2, %v979_v52, -inf }
 0x280   : > { %989 = vmax.xlane.f32.xlu0 %v988_v53 }
 0x301   : > { %v799_v54 = vpop.xlane.xlu0 %798 }
 0x302   : > { %v801_v55 = vsub.f32 %v4172_v46, %v799_v54 }
 0x303   : > { %v796_v56 = vpop.xlane.xlu1 %795 }
 0x304   : > { %v804_v57 = vmul.f32 1.442695, %v801_v55  ;;  %v800_v58 = vsub.f32 %v784_v48, %v796_v56 }
 0x306   : > { %4474 = vpow2.f32 %v804_v57  ;;  %v802_v59 = vmul.f32 1.442695, %v800_v58 }
 0x307   : > { %v993_v60 = vpop.xlane.xlu1 %992 }
 0x308   : > { %4476 = vpow2.f32 %v802_v59  ;;  %v995_v61 = vsub.f32 %v4186_v50, %v993_v60 }
 0x309   : > { %v990_v62 = vpop.xlane.xlu0 %989 }
 0x30a   : > { %v998_v63 = vmul.f32 1.442695, %v995_v61  ;;  %v994_v0 = vsub.f32 %v979_v52, %v990_v62 }
 0x30c   : > { %4478 = vpow2.f32 %v998_v63  ;;  %v996_v2 = vmul.f32 1.442695, %v994_v0 }
 0x30e   : > { %4480 = vpow2.f32 %v996_v2 }
 0x313   : > { %v4475_v3 = vpop.eup %4474 }
 0x314   : > { %v809_v5 = vsel %vm793_vm2, %v4475_v3, 0.0 }
 0x315   : > { %v4477_v6 = vpop.eup %4476  ;;  %810 = vadd.xlane.f32.xlu1 %v809_v5 }
 0x316   : > { %v806_v7 = vsel %vm793_vm2, %v4477_v6, 0.0 }
 0x317   : > { %807 = vadd.xlane.f32.xlu0 %v806_v7 }
 0x319   : > { %v4479_v10 = vpop.eup %4478 }
 0x31a   : > { %v1003_v12 = vsel %vm793_vm2, %v4479_v10, 0.0 }
 0x31b   : > { %v4481_v13 = vpop.eup %4480  ;;  %1004 = vadd.xlane.f32.xlu1 %v1003_v12 }
 0x31c   : > { %v1000_v14 = vsel %vm793_vm2, %v4481_v13, 0.0 }
 0x31d   : > { %1001 = vadd.xlane.f32.xlu0 %v1000_v14 }
 0x32c   : > { %1012 = vrot.lane.b32.xlu1 %v5089_v45, %s4722_s28 }
 0x330   : > { %1267 = vrot.lane.b32.xlu1 %v5049_v27, %s4723_s24 }
 0x333   : > { %1014 = vrot.lane.b32.xlu0 %v5087_v43, %s4722_s28 }
 0x334   : > { %1261 = vrot.lane.b32.xlu1 %v5055_v32, %s4724_s27 }
 0x337   : > { %1265 = vrot.lane.b32.xlu0 %v5051_v30, %s4723_s24 }
 0x338   : > { %1550 = vrot.lane.b32.xlu1 %v5049_v27, %s4725_s12 }
 0x33b   : > { %1263 = vrot.lane.b32.xlu0 %v5063_v33, %s4724_s27 }
 0x33c   : > { %1544 = vrot.lane.b32.xlu1 %v5055_v32, %s4726_s17 }
 0x33f   : > { %1548 = vrot.lane.b32.xlu0 %v5051_v30, %s4725_s12 }
 0x343   : > { %1546 = vrot.lane.b32.xlu0 %v5063_v33, %s4726_s17 }
 0x39e   : > { %v811_v15 = vpop.xlane.xlu1 %810 }
 0x39f   : > { %4482 = vrcp.f32 %v811_v15 }
 0x3a0   : > { %v808_v16 = vpop.xlane.xlu0 %807 }
 0x3a1   : > { %4484 = vrcp.f32 %v808_v16 }
 0x3a4   : > { %v1005_v18 = vpop.xlane.xlu1 %1004 }
 0x3a5   : > { %4486 = vrcp.f32 %v1005_v18 }
 0x3a6   : > { %v1002_v21 = vpop.xlane.xlu0 %1001 }
 0x3a7   : > { %4488 = vrcp.f32 %v1002_v21 }
 0x3a8   : > { %v1013_v30 = vpop.permute.xlu1 %1012 }
 0x3aa   : > { %v1015_v24 = vpop.permute.xlu0 %1014 }
 0x3ab   : > { %4187 = vmatprep.subr.mxu0 %v1015_v24 }
 0x3ac   : > { %v4483_v25 = vpop.eup %4482  ;;  %v1268_v35 = vpop.permute.xlu1 %1267 }
 0x3ad   : > { %v815_v28 = vmul.f32 %v4483_v25, %v4475_v3 }
 0x3ae   : > { %v4485_v26 = vpop.eup %4484  ;;  %v1266_v42 = vpop.permute.xlu0 %1265 }
 0x3af   : > { %v814_v27 = vmul.f32 %v4485_v26, %v4477_v6 }
 0x3b0   : > { %v1262_v39 = vpop.permute.xlu1 %1261 }
 0x3b1   : > { %4177 = vmatprep.mubr.msk.f32.mxu0 %vm793_vm2, %v814_v27 }
 0x3b2   : > { %4178 = vmatmul.mubr.msk.f32.vlgmr.msra.gmra.mxu0 %vm793_vm2, %v815_v28  ;;  %v4487_v29 = vpop.eup %4486  ;;  %v1264_v47 = vpop.permute.xlu0 %1263 }
 0x3b3   : > { %4188 = vmatpush3.msra.mxu0 %v1015_v24  ;;  %v1009_v34 = vmul.f32 %v4487_v29, %v4479_v10 }
 0x3b4   : > { %v4489_v32 = vpop.eup %4488  ;;  %4189 = vmatprep.subr.mxu0 %v1013_v30  ;;  %v1551_v46 = vpop.permute.xlu1 %1550 }
 0x3b5   : > { %4190 = vmatpush3.msra.mxu0 %v1013_v30  ;;  %v1008_v33 = vmul.f32 %v4489_v32, %v4481_v13 }
 0x3b6   : > { %4194 = vmatprep.subr.mxu0 %v494_v31  ;;  %v1549_v49 = vpop.permute.xlu0 %1548 }
 0x3b7   : > { %4191 = vmatprep.mubr.msk.f32.mxu0 %vm793_vm2, %v1008_v33 }
 0x3b8   : > { %4192 = vmatmul.mubr.msk.f32.vlgmr.msra.gmra.mxu0 %vm793_vm2, %v1009_v34  ;;  %v1545_v48 = vpop.permute.xlu1 %1544 }
 0x3b9   : > { %4195 = vmatpush3.msra.mxu0 %v494_v31 }
 0x3ba   : > { %4204 = vmatprep.subr.msk.mxu0 %vm707_vm1, %v1268_v35  ;;  %v1547_v50 = vpop.permute.xlu0 %1546 }
 0x472   : > { %v4179_v37 = vpop.f32.mrf.mxu0 }
 0x474   : > { %v888_v38 = vpop.f32.mrf.mxu0 }
 0x475   : > { %4201 = vmatprep.mubr.msk.f32.mxu1 %vm707_vm1, %v888_v38 }
 0x476   : > { %4202 = vmatmul.mubr.msk.f32.vlgmr.msra.gmra.mxu1 %vm707_vm1, %v4179_v37  ;;  %v495_v37 = vld [vmem:[%s5557_s5 + $0x10] sm:$0xff] }
 0x478   : > { %v4193_v41 = vpop.f32.mrf.mxu0 }
 0x47a   : > { %v1090_v44 = vpop.f32.mrf.mxu0 }
 0x47b   : > { %4196 = vmatprep.mubr.msk.f32.mxu0 %vm707_vm1, %v1090_v44 }
 0x47c   : > { %4197 = vmatmul.mubr.msk.f32.vlgmr.msra.gmra.mxu0 %vm707_vm1, %v4193_v41 }
 0x47d   : > { %4205 = vmatpush3.xpose.msk.msra.mxu0 %vm707_vm1, %v1268_v35  ;;  %4208 = vmatprep.mubr.msk.f32.mxu0 %vm707_vm1, %v1262_v39 }
 0x47e   : > { %4206 = vmatprep.subr.msk.mxu0 %vm707_vm1, %v1266_v42 }
 0x481   : > { %4207 = vmatpush3.xpose.msk.msra.mxu0 %vm707_vm1, %v1266_v42 }
 0x482   : > { %4223 = vmatprep.subr.msk.mxu0 %vm707_vm1, %v1551_v46 }
 0x484   : > { %4209 = vmatmul.mubr.msk.f32.vlgmr.msra.gmra.mxu0 %vm707_vm1, %v1264_v47 }
 0x485   : > { %4224 = vmatpush3.xpose.msk.msra.mxu0 %vm707_vm1, %v1551_v46  ;;  %4227 = vmatprep.mubr.msk.f32.mxu0 %vm707_vm1, %v1545_v48 }
 0x486   : > { %4225 = vmatprep.subr.msk.mxu0 %vm707_vm1, %v1549_v49 }
 0x489   : > { %4226 = vmatpush3.xpose.msk.msra.mxu0 %vm707_vm1, %v1549_v49 }
 0x48c   : > { %4228 = vmatmul.mubr.msk.f32.vlgmr.msra.gmra.mxu0 %vm707_vm1, %v1547_v50  ;;  %v496_v50 = vld [vmem:[%s5557_s5 + $0x18] sm:$0xff] }
 0x536   : > { %v4203_v51 = vpop.f32.mrf.mxu1 }
 0x538   : > { %v1252_v38 = vpop.f32.mrf.mxu1 }
 0x53c   : > { %v4198_v52 = vpop.f32.mrf.mxu0 }
 0x53d   : > { %v5149_v53 = vadd.f32 %v4203_v51, %v4198_v52 }
 0x53e   : > { %v5151_v54 = vpop.f32.mrf.mxu0 }
 0x53f   : > { %v1253_v52 = vadd.f32 %v1252_v38, %v5151_v54  ;;  %v1864_v38 = vsub.s32 5, %v4978_v1 }
 0x544   : > { %v4210_v55 = vpop.f32.mrf.mxu0 }
 0x545   : > { %v1355_v56 = vsel %vm793_vm2, %v4210_v55, -inf }
 0x546   : > { %1356 = vmax.xlane.f32.xlu0 %v1355_v56  ;;  %v1343_v57 = vpop.f32.mrf.mxu0 }
 0x547   : > { %v1352_v58 = vsel %vm793_vm2, %v1343_v57, -inf }
 0x548   : > { %1353 = vmax.xlane.f32.xlu1 %v1352_v58 }
 0x54c   : > { %v4229_v7 = vpop.f32.mrf.mxu0 }
 0x54d   : > { %v1638_v13 = vsel %vm793_vm2, %v4229_v7, -inf }
 0x54e   : > { %v1626_v10 = vpop.f32.mrf.mxu0 }
 0x54f   : > { %v1635_v12 = vsel %vm793_vm2, %v1626_v10, -inf }
 0x5cf   : > { %v1357_v59 = vpop.xlane.xlu0 %1356 }
 0x5d0   : > { %v1359_v60 = vsub.f32 %v4210_v55, %v1357_v59 }
 0x5d1   : > { %v1354_v61 = vpop.xlane.xlu1 %1353 }
 0x5d2   : > { %v1362_v62 = vmul.f32 1.442695, %v1359_v60  ;;  %v1358_v63 = vsub.f32 %v1343_v57, %v1354_v61  ;;  %v1829_v60 = vsub.s32 3, %v4978_v1 }
 0x5d4   : > { %4490 = vpow2.f32 %v1362_v62  ;;  %v1360_v0 = vmul.f32 1.442695, %v1358_v63  ;;  %v1830_v61 = vrot.slane %v5003_v11, %v1829_v60 }
 0x5d6   : > { %4492 = vpow2.f32 %v1360_v0 }
 0x5e1   : > { %v4491_v2 = vpop.eup %4490 }
 0x5e2   : > { %v1367_v3 = vsel %vm793_vm2, %v4491_v2, 0.0 }
 0x5e3   : > { %v4493_v5 = vpop.eup %4492  ;;  %1368 = vadd.xlane.f32.xlu1 %v1367_v3 }
 0x5e4   : > { %v1364_v6 = vsel %vm793_vm2, %v4493_v5, 0.0 }
 0x5e5   : > { %1365 = vadd.xlane.f32.xlu0 %v1364_v6 }
 0x5f4   : > { %1374 = vrot.lane.b32.xlu1 %v5089_v45, %s4724_s27 }
 0x5fb   : > { %1376 = vrot.lane.b32.xlu0 %v5087_v43, %s4724_s27 }
 0x618   : > { %1636 = vmax.xlane.f32.xlu1 %v1635_v12 }
 0x61a   : > { %1639 = vmax.xlane.f32.xlu0 %v1638_v13 }
 0x66c   : > { %v1369_v14 = vpop.xlane.xlu1 %1368 }
 0x66d   : > { %4494 = vrcp.f32 %v1369_v14 }
 0x66e   : > { %v1366_v15 = vpop.xlane.xlu0 %1365 }
 0x66f   : > { %4496 = vrcp.f32 %v1366_v15 }
 0x670   : > { %v1375_v18 = vpop.permute.xlu1 %1374 }
 0x672   : > { %v1377_v16 = vpop.permute.xlu0 %1376 }
 0x673   : > { %4211 = vmatprep.subr.mxu1 %v1377_v16 }
 0x674   : > { %4212 = vmatpush3.msra.mxu1 %v1377_v16 }
 0x675   : > { %4213 = vmatprep.subr.mxu1 %v1375_v18 }
 0x676   : > { %4214 = vmatpush3.msra.mxu1 %v1375_v18 }
 0x677   : > { %4218 = vmatprep.subr.mxu1 %v495_v37 }
 0x67a   : > { %v4495_v21 = vpop.eup %4494 }
 0x67b   : > { %v1373_v26 = vmul.f32 %v4495_v21, %v4491_v2 }
 0x67c   : > { %v4497_v24 = vpop.eup %4496 }
 0x67d   : > { %v1372_v25 = vmul.f32 %v4497_v24, %v4493_v5 }
 0x67f   : > { %4215 = vmatprep.mubr.msk.f32.mxu1 %vm793_vm2, %v1372_v25  ;;  %v500_v25 = vld [vmem:[#allocation7 + $0x18] sm:$0xff] }
 0x680   : > { %4216 = vmatmul.mubr.msk.f32.vlgmr.msra.gmra.mxu1 %vm793_vm2, %v1373_v26  ;;  %4242 = vmatprep.subr.mxu0 %v500_v25  ;;  %v498_v26 = vld [vmem:[#allocation7 + $0x8] sm:$0xff] }
 0x681   : > { %4219 = vmatpush3.msra.mxu1 %v495_v37  ;;  %4243 = vmatpush3.msra.mxu0 %v500_v25 }
 0x6a1   : > { %v1637_v27 = vpop.xlane.xlu1 %1636 }
 0x6a2   : > { %v1641_v28 = vsub.f32 %v1626_v10, %v1637_v27  ;;  %v497_v27 = vld [vmem:[#allocation7] sm:$0xff] }
 0x6a3   : > { %v1640_v29 = vpop.xlane.xlu0 %1639 }
 0x6a4   : > { %v1643_v30 = vmul.f32 1.442695, %v1641_v28  ;;  %v1642_v31 = vsub.f32 %v4229_v7, %v1640_v29  ;;  %v508_v28 = vld [vmem:[%s5559_s7 + $0x38] sm:$0xff]  ;;  %v507_v29 = vld [vmem:[%s5559_s7 + $0x30] sm:$0xff] }
 0x6a6   : > { %4498 = vpow2.f32 %v1643_v30  ;;  %v1645_v32 = vmul.f32 1.442695, %v1642_v31  ;;  %v506_v30 = vld [vmem:[%s5559_s7 + $0x28] sm:$0xff]  ;;  %v505_v31 = vld [vmem:[%s5559_s7 + $0x20] sm:$0xff] }
 0x6a8   : > { %4500 = vpow2.f32 %v1645_v32 }
 0x6b3   : > { %v4499_v33 = vpop.eup %4498 }
 0x6b4   : > { %v1647_v34 = vsel %vm793_vm2, %v4499_v33, 0.0 }
 0x6b5   : > { %v4501_v35 = vpop.eup %4500  ;;  %1648 = vadd.xlane.f32.xlu0 %v1647_v34 }
 0x6b6   : > { %v1650_v36 = vsel %vm793_vm2, %v4501_v35, 0.0 }
 0x6b7   : > { %1651 = vadd.xlane.f32.xlu1 %v1650_v36 }
 0x6c8   : > { %1657 = vrot.lane.b32.xlu1 %v5089_v45, %s4726_s17 }
 0x6cb   : > { %1659 = vrot.lane.b32.xlu0 %v5087_v43, %s4726_s17 }
 0x73e   : > { %v1649_v39 = vpop.xlane.xlu0 %1648 }
 0x73f   : > { %4502 = vrcp.f32 %v1649_v39 }
 0x740   : > { %v4217_v41 = vpop.f32.mrf.mxu1  ;;  %v1652_v42 = vpop.xlane.xlu1 %1651 }
 0x741   : > { %4504 = vrcp.f32 %v1652_v42  ;;  %v1870_v42 = vsub.s32 6, %v4978_v1 }
 0x742   : > { %v1452_v44 = vpop.f32.mrf.mxu1  ;;  %v1660_v46 = vpop.permute.xlu0 %1659 }
 0x743   : > { %4220 = vmatprep.mubr.msk.f32.mxu1 %vm707_vm1, %v1452_v44  ;;  %4230 = vmatprep.subr.mxu1 %v1660_v46 }
 0x744   : > { %4221 = vmatmul.mubr.msk.f32.vlgmr.msra.gmra.mxu1 %vm707_vm1, %v4217_v41  ;;  %v1658_v47 = vpop.permute.xlu1 %1657  ;;  %v1865_v41 = vrot.slane %v5003_v11, %v1864_v38 }
 0x745   : > { %4231 = vmatpush3.msra.mxu1 %v1660_v46 }
 0x746   : > { %4232 = vmatprep.subr.mxu1 %v1658_v47 }
 0x747   : > { %4233 = vmatpush3.msra.mxu1 %v1658_v47 }
 0x748   : > { %4237 = vmatprep.subr.mxu1 %v496_v50 }
 0x74c   : > { %v4503_v45 = vpop.eup %4502 }
 0x74d   : > { %v1655_v48 = vmul.f32 %v4503_v45, %v4499_v33 }
 0x74e   : > { %v4505_v43 = vpop.eup %4504 }
 0x74f   : > { %4234 = vmatprep.mubr.msk.f32.mxu1 %vm793_vm2, %v1655_v48  ;;  %v1656_v49 = vmul.f32 %v4505_v43, %v4501_v35  ;;  %v1871_v48 = vrot.slane %v5003_v11, %v1870_v42 }
 0x751   : > { %4235 = vmatmul.mubr.msk.f32.vlgmr.msra.gmra.mxu1 %vm793_vm2, %v1656_v49 }
 0x752   : > { %4238 = vmatpush3.msra.mxu1 %v496_v50 }
 0x753   : > { %4253 = vmatprep.subr.mxu1 %v508_v28 }
 0x804   : > { %v4222_v51 = vpop.f32.mrf.mxu1 }
 0x805   : > { %v1543_v55 = vadd.f32 %v4222_v51, %v5149_v53  ;;  %v504_v51 = vld [vmem:[%s5559_s7 + $0x18] sm:$0xff] }
 0x806   : > { %v1533_v56 = vpop.f32.mrf.mxu1 }
 0x807   : > { %v1542_v57 = vadd.f32 %v1533_v56, %v1253_v52  ;;  %v503_v52 = vld [vmem:[%s5559_s7 + $0x10] sm:$0xff]  ;;  %v501_v56 = vld [vmem:[%s5559_s7] sm:$0xff] }
 0x811   : > { %v4236_v58 = vpop.f32.mrf.mxu1 }
 0x813   : > { %v1735_v59 = vpop.f32.mrf.mxu1 }
 0x814   : > { %4239 = vmatprep.mubr.msk.f32.mxu1 %vm707_vm1, %v1735_v59 }
 0x815   : > { %4240 = vmatmul.mubr.msk.f32.vlgmr.msra.gmra.mxu1 %vm707_vm1, %v4236_v58 }
 0x816   : > { %4254 = vmatpush3.msra.mxu1 %v508_v28  ;;  %v3928_v28 = vld [vmem:[%s5555_s3 + $0x30] sm:$0xff] }
 0x817   : > { %4255 = vmatprep.subr.mxu1 %v507_v29 }
 0x818   : > { %4256 = vmatpush3.msra.mxu1 %v507_v29  ;;  %v3927_v29 = vld [vmem:[%s5555_s3 + $0x28] sm:$0xff] }
 0x819   : > { %4257 = vmatprep.subr.mxu1 %v506_v30 }
 0x81a   : > { %4258 = vmatpush3.msra.mxu1 %v506_v30  ;;  %v3926_v30 = vld [vmem:[%s5555_s3 + $0x20] sm:$0xff] }
 0x81b   : > { %4259 = vmatprep.subr.mxu1 %v505_v31 }
 0x81c   : > { %4260 = vmatpush3.msra.mxu1 %v505_v31  ;;  %v3933_v31 = vld [vmem:[%s5556_s4 + $0x38] sm:$0xff] }
 0x81d   : > { %4261 = vmatprep.subr.mxu1 %v504_v51 }
 0x81e   : > { %4262 = vmatpush3.msra.mxu1 %v504_v51 }
 0x81f   : > { %4263 = vmatprep.subr.mxu1 %v503_v52 }
 0x820   : > { %4264 = vmatpush3.msra.mxu1 %v503_v52 }
 0x8d5   : > { %v4241_v62 = vpop.f32.mrf.mxu1 }
 0x8d6   : > { %v1826_v63 = vadd.f32 %v4241_v62, %v1543_v55  ;;  %v502_v55 = vld [vmem:[%s5559_s7 + $0x8] sm:$0xff] }
 0x8d7   : > { %v1816_v0 = vpop.f32.mrf.mxu1  ;;  %4265 = vmatprep.subr.mxu1 %v502_v55 }
 0x8d8   : > { %v1832_v54 = vadd.f32 %v1830_v61, %v1826_v63  ;;  %v1825_v2 = vadd.f32 %v1816_v0, %v1542_v57  ;;  %4266 = vmatpush3.msra.mxu1 %v502_v55  ;;  %v3920_v57 = vld [vmem:[%s5561_s9] ss:$0 sm:$0xff] }
 0x8d9   : > { %4267 = vmatprep.subr.mxu1 %v501_v56 }
 0x8da   : > { %v1831_v53 = vadd.f32 %v1830_v61, %v1825_v2  ;;  %v1834_v3 = vadd.f32 %v1832_v54, %v5028_v19  ;;  %4268 = vmatpush3.msra.mxu1 %v501_v56  ;;  %v1965_v54 = vsub.s32 4, %v4978_v1 }
 0x8dc   : > { %v1838_v5 = vsel %vm516_vm0, %v1834_v3, 0.0  ;;  %v1833_v6 = vadd.f32 %v1831_v53, %v5038_v22  ;;  %v499_v22 = vld [vmem:[#allocation7 + $0x10] sm:$0xff]  ;;  %v1966_v2 = vrot.slane %v5003_v11, %v1965_v54 }
 0x8dd   : > { %1839 = vadd.xlane.f32.xlu0 %v1838_v5  ;;  %4244 = vmatprep.subr.mxu0 %v499_v22 }
 0x8de   : > { %v1835_v7 = vsel %vm516_vm0, %v1833_v6, 0.0  ;;  %4245 = vmatpush3.msra.mxu0 %v499_v22 }
 0x8df   : > { %1836 = vadd.xlane.f32.xlu1 %v1835_v7  ;;  %4246 = vmatprep.subr.mxu0 %v498_v26 }
 0x8e0   : > { %4247 = vmatpush3.msra.mxu0 %v498_v26 }
 0x8e1   : > { %4248 = vmatprep.subr.mxu0 %v497_v27 }
 0x8e2   : > { %4249 = vmatpush3.msra.mxu0 %v497_v27  ;;  %v3929_v27 = vld [vmem:[%s5555_s3 + $0x38] sm:$0xff] }
 0x8e3   : > { %4272 = vmatprep.subr.mxu0 %v3929_v27 }
 0x966   : > { %v1840_v10 = vpop.xlane.xlu0 %1839 }
 0x967   : > { %v1843_v12 = vmul.f32 0.03125, %v1840_v10 }
 0x968   : > { %v1837_v13 = vpop.xlane.xlu1 %1836 }
 0x969   : > { %v1845_v14 = vsub.f32 %v1834_v3, %v1843_v12  ;;  %v1842_v15 = vmul.f32 0.03125, %v1837_v13 }
 0x96b   : > { %v1844_v16 = vsub.f32 %v1833_v6, %v1842_v15  ;;  %v1847_v18 = vmul.f32 %v1845_v14, %v1845_v14 }
 0x96d   : > { %v1851_v21 = vsel %vm516_vm0, %v1847_v18, 0.0  ;;  %v1846_v24 = vmul.f32 %v1844_v16, %v1844_v16 }
 0x96e   : > { %1852 = vadd.xlane.f32.xlu1 %v1851_v21 }
 0x96f   : > { %v1848_v19 = vsel %vm516_vm0, %v1846_v24, 0.0 }
 0x970   : > { %1849 = vadd.xlane.f32.xlu0 %v1848_v19 }
 0x9f7   : > { %v1853_v32 = vpop.xlane.xlu1 %1852 }
 0x9f8   : > { %v1855_v33 = vmul.f32 0.03125, %v1853_v32  ;;  %v5260_v32 = vld [vmem:[%s5560_s8 + $0x10] sm:$0xff] }
 0x9f9   : > { %v1850_v34 = vpop.xlane.xlu0 %1849 }
 0x9fa   : > { %v1857_v35 = vadd.f32 1e-05, %v1855_v33  ;;  %v1854_v36 = vmul.f32 0.03125, %v1850_v34  ;;  %v2219_v33 = vrot.slane %v5260_v32, %v4990_v4 }
 0x9fc   : > { %4506 = vrsqrt.f32 %v1857_v35  ;;  %v1856_v37 = vadd.f32 1e-05, %v1854_v36 }
 0x9fe   : > { %4508 = vrsqrt.f32 %v1856_v37 }
 0xa09   : > { %v4507_v39 = vpop.eup %4506 }
 0xa0a   : > { %v1861_v44 = vmul.f32 %v4507_v39, %v1845_v14 }
 0xa0b   : > { %v4509_v46 = vpop.eup %4508 }
 0xa0c   : > { %v1860_v47 = vmul.f32 %v4509_v46, %v1844_v16  ;;  %v1867_v45 = vmul.f32 %v1865_v41, %v1861_v44  ;;  %v2079_v44 = vsub.s32 7, %v4978_v1 }
 0xa0e   : > { %v1866_v43 = vmul.f32 %v1865_v41, %v1860_v47  ;;  %v1873_v50 = vadd.f32 %v1871_v48, %v1867_v45  ;;  %v2080_v46 = vrot.slane %v5003_v11, %v2079_v44  ;;  %v3932_v11 = vld [vmem:[%s5556_s4 + $0x30] sm:$0xff] }
 0xa10   : > { %v1872_v49 = vadd.f32 %v1871_v48, %v1866_v43  ;;  %v3925_v43 = vld [vmem:[%s5560_s8 + $0x8] ss:$0 sm:$0xff] }
 0xa12   : > { %4250 = vmatprep.mubr.msk.f32.mxu0 %vm516_vm0, %v1872_v49 }
 0xa13   : > { %4251 = vmatmul.mubr.msk.f32.vlgmr.msra.gmra.mxu0 %vm516_vm0, %v1873_v50 }
 0xa14   : > { %4273 = vmatpush3.msra.mxu0 %v3929_v27 }
 0xa15   : > { %4274 = vmatprep.subr.mxu0 %v3928_v28 }
 0xa16   : > { %4275 = vmatpush3.msra.mxu0 %v3928_v28 }
 0xa17   : > { %4276 = vmatprep.subr.mxu0 %v3927_v29 }
 0xa18   : > { %4277 = vmatpush3.msra.mxu0 %v3927_v29 }
 0xa19   : > { %4278 = vmatprep.subr.mxu0 %v3926_v30 }
 0xa1a   : > { %4279 = vmatpush3.msra.mxu0 %v3926_v30 }
 0xa1b   : > { %4283 = vmatprep.subr.mxu0 %v3933_v31 }
 0xad3   : > { %v4252_v58 = vpop.f32.mrf.mxu0 }
 0xad4   : > { %v1958_v59 = vadd.f32 %v4252_v58, %v3920_v57 }
 0xad5   : > { %v1952_v61 = vpop.f32.mrf.mxu0 }
 0xad6   : > { %v1953_v62 = vadd.f32 %v3920_v57, %v1952_v61  ;;  %v1962_v0 = vmax.f32 %v1958_v59, 0.0 }
 0xad8   : > { %v1961_v63 = vmax.f32 %v1953_v62, 0.0  ;;  %v2211_v62 = vrot.slane %v5260_v32, %v5045_v23 }
 0xada   : > { %4269 = vmatprep.mubr.msk.f32.mxu1 %vm1967_vm3, %v1961_v63 }
 0xadb   : > { %4270 = vmatmul.mubr.msk.f32.vlgmr.msra.gmra.mxu1 %vm1967_vm3, %v1962_v0 }
 0xb9b   : > { %v4271_v53 = vpop.f32.mrf.mxu1 }
 0xb9c   : > { %v2046_v3 = vadd.f32 %v4271_v53, %v1966_v2  ;;  %v2229_v53 = vrot.slane %v5260_v32, %v618_v40 }
 0xb9d   : > { %v2040_v5 = vpop.f32.mrf.mxu1 }
 0xb9e   : > { %v2041_v6 = vadd.f32 %v2040_v5, %v1966_v2  ;;  %v2050_v7 = vadd.f32 %v2046_v3, %v1873_v50 }
 0xba0   : > { %v2054_v10 = vsel %vm516_vm0, %v2050_v7, 0.0  ;;  %v2049_v12 = vadd.f32 %v2041_v6, %v1872_v49 }
 0xba1   : > { %2055 = vadd.xlane.f32.xlu1 %v2054_v10 }
 0xba2   : > { %v2051_v13 = vsel %vm516_vm0, %v2049_v12, 0.0 }
 0xba3   : > { %2052 = vadd.xlane.f32.xlu0 %v2051_v13 }
 0xc2a   : > { %v2056_v14 = vpop.xlane.xlu1 %2055 }
 0xc2b   : > { %v2058_v15 = vmul.f32 0.03125, %v2056_v14 }
 0xc2c   : > { %v2053_v16 = vpop.xlane.xlu0 %2052 }
 0xc2d   : > { %v2060_v18 = vsub.f32 %v2050_v7, %v2058_v15  ;;  %v2057_v21 = vmul.f32 0.03125, %v2053_v16 }
 0xc2f   : > { %v2059_v24 = vsub.f32 %v2049_v12, %v2057_v21  ;;  %v2062_v19 = vmul.f32 %v2060_v18, %v2060_v18 }
 0xc31   : > { %v2066_v25 = vsel %vm516_vm0, %v2062_v19, 0.0  ;;  %v2061_v22 = vmul.f32 %v2059_v24, %v2059_v24 }
 0xc32   : > { %2067 = vadd.xlane.f32.xlu1 %v2066_v25 }
 0xc33   : > { %v2063_v26 = vsel %vm516_vm0, %v2061_v22, 0.0 }
 0xc34   : > { %2064 = vadd.xlane.f32.xlu0 %v2063_v26 }
 0xc4a   : > { %2221 = vrot.lane.b32.xlu0 %v2219_v33, %s4719_s11  ;;  %s5603_s11 = sld [smem:[#allocation21_spill]] }
 0xcbb   : > { %v2068_v34 = vpop.xlane.xlu1 %2067 }
 0xcbc   : > { %v2070_v35 = vmul.f32 0.03125, %v2068_v34 }
 0xcbd   : > { %v2065_v36 = vpop.xlane.xlu0 %2064 }
 0xcbe   : > { %v2072_v37 = vadd.f32 1e-05, %v2070_v35  ;;  %v2069_v39 = vmul.f32 0.03125, %v2065_v36 }
 0xcc0   : > { %4510 = vrsqrt.f32 %v2072_v37  ;;  %v2071_v41 = vadd.f32 1e-05, %v2069_v39 }
 0xcc1   : > { %v2222_v59 = vpop.permute.xlu0 %2221 }
 0xcc2   : > { %4512 = vrsqrt.f32 %v2071_v41 }
 0xccd   : > { %v4511_v47 = vpop.eup %4510 }
 0xcce   : > { %v2076_v45 = vmul.f32 %v4511_v47, %v2060_v18 }
 0xccf   : > { %v4513_v48 = vpop.eup %4512 }
 0xcd0   : > { %v2075_v49 = vmul.f32 %v4513_v48, %v2059_v24  ;;  %v2082_v50 = vmul.f32 %v2080_v46, %v2076_v45 }
 0xcd2   : > { %v2081_v51 = vmul.f32 %v2080_v46, %v2075_v49  ;;  %v2088_v52 = vadd.f32 %v3925_v43, %v2082_v50 }
 0xcd4   : > { %v2087_v55 = vadd.f32 %v3925_v43, %v2081_v51  ;;  %v2124_v57 = vadd.f32 %v2088_v52, %v4997_v9  ;;  %v3930_v9 = vld [vmem:[%s5556_s4 + $0x20] sm:$0xff] }
 0xcd6   : > { %v2123_v56 = vadd.f32 %v2087_v55, %v4995_v8  ;;  %v5279_v58 = vadd.f32 %v2087_v55, %v5032_v20  ;;  %v3931_v8 = vld [vmem:[%s5556_s4 + $0x28] sm:$0xff]  ;;  %v5291_v20 = vadd.f32 %v2088_v52, %v5022_v17 }
 0xcd8   : > { %4280 = vmatprep.mubr.msk.f32.mxu0 %vm516_vm0, %v2123_v56 }
 0xcd9   : > { %4281 = vmatmul.mubr.msk.f32.vlgmr.msra.gmra.mxu0 %vm516_vm0, %v2124_v57 }
 0xcda   : > { %4284 = vmatpush3.msra.mxu0 %v3933_v31  ;;  %4291 = vmatprep.mubr.msk.f32.mxu0 %vm516_vm0, %v5279_v58 }
 0xcdb   : > { %4285 = vmatprep.subr.mxu0 %v3932_v11 }
 0xcdc   : > { %4286 = vmatpush3.msra.mxu0 %v3932_v11 }
 0xcdd   : > { %4287 = vmatprep.subr.mxu0 %v3931_v8 }
 0xcde   : > { %4288 = vmatpush3.msra.mxu0 %v3931_v8 }
 0xcdf   : > { %4289 = vmatprep.subr.mxu0 %v3930_v9 }
 0xce0   : > { %4290 = vmatpush3.msra.mxu0 %v3930_v9 }
 0xce1   : > { %4292 = vmatmul.mubr.msk.f32.vlgmr.msra.gmra.mxu0 %vm516_vm0, %v5291_v20 }
 0xd99   : > { %v4282_v61 = vpop.f32.mrf.mxu0 }
 0xd9a   : > { %v5297_v63 = vadd.f32 %v4282_v61, %v2222_v59  ;;  %v2213_v7 = vadd.f32 %v4282_v61, %v2211_v62 }
 0xd9b   : > { %v2199_v0 = vpop.f32.mrf.mxu0 }
 0xd9c   : > { %v2212_v2 = vadd.f32 %v2211_v62, %v2199_v0  ;;  %2511 = vrot.lane.b32.xlu0 %v5297_v63, %s4721_s14  ;;  %2315 = vrot.lane.b32.xlu1 %v5297_v63, %s4720_s16  ;;  %v5308_v3 = vadd.f32 %v2222_v59, %v2199_v0  ;;  %v5325_v40 = vmul.f32 0.35355338, %v2213_v7 }
 0xd9e   : > { %v5303_v17 = vmul.f32 0.35355338, %v2212_v2 }
 0xda0   : > { %4298 = vmatprep.mubr.msk.f32.mxu1 %vm707_vm1, %v5303_v17  ;;  %2505 = vrot.lane.b32.xlu0 %v5303_v17, %s4722_s28 }
 0xda1   : > { %v4293_v5 = vpop.f32.mrf.mxu0  ;;  %2313 = vrot.lane.b32.xlu1 %v5308_v3, %s4720_s16 }
 0xda2   : > { %v5316_v6 = vadd.f32 %v4293_v5, %v2229_v53 }
 0xda3   : > { %v2302_v10 = vpop.f32.mrf.mxu0 }
 0xda4   : > { %v5318_v12 = vadd.f32 %v2302_v10, %v2229_v53  ;;  %4301 = vmatprep.subr.mxu0 %v5316_v6 }
 0xda5   : > { %4302 = vmatpush3.msra.mxu0 %v5316_v6  ;;  %2509 = vrot.lane.b32.xlu1 %v5308_v3, %s4721_s14  ;;  %s5605_s14 = sld [smem:[#allocation22_spill]] }
 0xda6   : > { %4303 = vmatprep.subr.mxu0 %v5318_v12 }
 0xda7   : > { %4304 = vmatpush3.msra.mxu0 %v5318_v12 }
 0xda9   : > { %2507 = vrot.lane.b32.xlu1 %v5325_v40, %s4722_s28 }
 0xe0e   : > { %v2316_v13 = vpop.permute.xlu1 %2315  ;;  %v2512_v14 = vpop.permute.xlu0 %2511 }
 0xe0f   : > { %4294 = vmatprep.subr.msk.mxu1 %vm707_vm1, %v2316_v13 }
 0xe10   : > { %4295 = vmatpush3.xpose.msk.msra.mxu1 %vm707_vm1, %v2316_v13 }
 0xe12   : > { %v2506_v16 = vpop.permute.xlu0 %2505 }
 0xe13   : > { %v2314_v15 = vpop.permute.xlu1 %2313 }
 0xe14   : > { %4296 = vmatprep.subr.msk.mxu1 %vm707_vm1, %v2314_v15 }
 0xe15   : > { %4297 = vmatpush3.xpose.msk.msra.mxu1 %vm707_vm1, %v2314_v15 }
 0xe16   : > { %4308 = vmatprep.subr.msk.mxu1 %vm707_vm1, %v2512_v14 }
 0xe17   : > { %v2510_v18 = vpop.permute.xlu1 %2509 }
 0xe18   : > { %4299 = vmatmul.mubr.msk.f32.vlgmr.msra.gmra.mxu1 %vm707_vm1, %v5325_v40 }
 0xe19   : > { %4309 = vmatpush3.xpose.msk.msra.mxu1 %vm707_vm1, %v2512_v14  ;;  %4312 = vmatprep.mubr.msk.f32.mxu1 %vm707_vm1, %v2506_v16 }
 0xe1a   : > { %4310 = vmatprep.subr.msk.mxu1 %vm707_vm1, %v2510_v18 }
 0xe1b   : > { %v2508_v21 = vpop.permute.xlu1 %2507 }
 0xe1d   : > { %4311 = vmatpush3.xpose.msk.msra.mxu1 %vm707_vm1, %v2510_v18 }
 0xe20   : > { %4313 = vmatmul.mubr.msk.f32.vlgmr.msra.gmra.mxu1 %vm707_vm1, %v2508_v21 }
 0xed8   : > { %v4300_v24 = vpop.f32.mrf.mxu1 }
 0xed9   : > { %v2405_v19 = vsel %vm793_vm2, %v4300_v24, -inf }
 0xeda   : > { %2406 = vmax.xlane.f32.xlu1 %v2405_v19  ;;  %v2393_v25 = vpop.f32.mrf.mxu1 }
 0xedb   : > { %v2402_v22 = vsel %vm793_vm2, %v2393_v25, -inf }
 0xedc   : > { %2403 = vmax.xlane.f32.xlu0 %v2402_v22 }
 0xee0   : > { %v4314_v26 = vpop.f32.mrf.mxu1 }
 0xee1   : > { %v2599_v29 = vsel %vm793_vm2, %v4314_v26, -inf }
 0xee2   : > { %v2587_v27 = vpop.f32.mrf.mxu1 }
 0xee3   : > { %v2596_v28 = vsel %vm793_vm2, %v2587_v27, -inf }
 0xee4   : > { %2597 = vmax.xlane.f32.xlu0 %v2596_v28 }
 0xee8   : > { %2600 = vmax.xlane.f32.xlu0 %v2599_v29 }
 0xf63   : > { %v2407_v30 = vpop.xlane.xlu1 %2406 }
 0xf64   : > { %v2409_v31 = vsub.f32 %v4300_v24, %v2407_v30 }
 0xf65   : > { %v2404_v33 = vpop.xlane.xlu0 %2403 }
 0xf66   : > { %v2412_v34 = vmul.f32 1.442695, %v2409_v31  ;;  %v2408_v35 = vsub.f32 %v2393_v25, %v2404_v33 }
 0xf68   : > { %4514 = vpow2.f32 %v2412_v34  ;;  %v2410_v36 = vmul.f32 1.442695, %v2408_v35 }
 0xf6a   : > { %4516 = vpow2.f32 %v2410_v36 }
 0xf6d   : > { %v2598_v37 = vpop.xlane.xlu0 %2597 }
 0xf6e   : > { %v2602_v39 = vsub.f32 %v2587_v27, %v2598_v37 }
 0xf70   : > { %v2604_v41 = vmul.f32 1.442695, %v2602_v39 }
 0xf71   : > { %v2601_v46 = vpop.xlane.xlu0 %2600 }
 0xf72   : > { %4518 = vpow2.f32 %v2604_v41  ;;  %v2603_v47 = vsub.f32 %v4314_v26, %v2601_v46 }
 0xf74   : > { %v2606_v45 = vmul.f32 1.442695, %v2603_v47 }
 0xf75   : > { %v4515_v48 = vpop.eup %4514 }
 0xf76   : > { %4520 = vpow2.f32 %v2606_v45  ;;  %v2417_v43 = vsel %vm793_vm2, %v4515_v48, 0.0 }
 0xf77   : > { %v4517_v49 = vpop.eup %4516  ;;  %2418 = vadd.xlane.f32.xlu0 %v2417_v43 }
 0xf78   : > { %v2414_v50 = vsel %vm793_vm2, %v4517_v49, 0.0 }
 0xf79   : > { %2415 = vadd.xlane.f32.xlu1 %v2414_v50 }
 0xf7f   : > { %v4519_v51 = vpop.eup %4518 }
 0xf80   : > { %v2608_v52 = vsel %vm793_vm2, %v4519_v51, 0.0 }
 0xf81   : > { %2609 = vadd.xlane.f32.xlu1 %v2608_v52 }
 0xf83   : > { %v4521_v55 = vpop.eup %4520 }
 0xf84   : > { %v2611_v56 = vsel %vm793_vm2, %v4521_v55, 0.0 }
 0xf85   : > { %2612 = vadd.xlane.f32.xlu0 %v2611_v56 }
 0xf92   : > { %2622 = vrot.lane.b32.xlu1 %v5316_v6, %s4722_s28 }
 0xf96   : > { %2875 = vrot.lane.b32.xlu1 %v5297_v63, %s4723_s24 }
 0xf9a   : > { %2873 = vrot.lane.b32.xlu1 %v5308_v3, %s4723_s24  ;;  %s4727_s24 = smov [#allocation8]  }
 0xf9b   : > { %2620 = vrot.lane.b32.xlu0 %v5318_v12, %s4722_s28  ;;  %s5505_s28 = scalar_lea.hbm %s5605_s14, %s3999_s25 }
 0xf9e   : > { %2871 = vrot.lane.b32.xlu1 %v5325_v40, %s4724_s27 }
 0xf9f   : > { %2869 = vrot.lane.b32.xlu0 %v5303_v17, %s4724_s27 }
 0xfa2   : > { %3156 = vrot.lane.b32.xlu1 %v5308_v3, %s4725_s12 }
 0xfa3   : > { %3158 = vrot.lane.b32.xlu0 %v5297_v63, %s4725_s12 }
 0xfa6   : > { %3154 = vrot.lane.b32.xlu1 %v5325_v40, %s4726_s17  ;;  %v3934_v40 = vld [vmem:[%s5557_s5 + $0x20] sm:$0xff] }
 0xfa7   : > { %3152 = vrot.lane.b32.xlu0 %v5303_v17, %s4726_s17  ;;  %v3935_v17 = vld [vmem:[%s5557_s5 + $0x28] sm:$0xff]  ;;  %4327 = vmatprep.subr.mxu1 %v3934_v40 }
 0xfa8   : > { %4328 = vmatpush3.msra.mxu1 %v3934_v40 }
0x1000   : > { %v2419_v57 = vpop.xlane.xlu0 %2418 }
0x1001   : > { %4522 = vrcp.f32 %v2419_v57 }
0x1002   : > { %v2416_v11 = vpop.xlane.xlu1 %2415 }
0x1003   : > { %4524 = vrcp.f32 %v2416_v11 }
0x100a   : > { %v2610_v8 = vpop.xlane.xlu1 %2609 }
0x100b   : > { %4526 = vrcp.f32 %v2610_v8 }
0x100e   : > { %v2613_v9 = vpop.xlane.xlu0 %2612  ;;  %v2623_v59 = vpop.permute.xlu1 %2622 }
0x100f   : > { %v4523_v61 = vpop.eup %4522  ;;  %4528 = vrcp.f32 %v2613_v9  ;;  %4315 = vmatprep.subr.mxu0 %v2623_v59 }
0x1010   : > { %v4525_v62 = vpop.eup %4524  ;;  %v2423_v63 = vmul.f32 %v4523_v61, %v4515_v48 }
0x1011   : > { %v2422_v0 = vmul.f32 %v4525_v62, %v4517_v49 }
0x1012   : > { %v2621_v2 = vpop.permute.xlu0 %2620  ;;  %v2876_v10 = vpop.permute.xlu1 %2875 }
0x1013   : > { %4305 = vmatprep.mubr.msk.f32.mxu0 %vm793_vm2, %v2422_v0 }
0x1014   : > { %4306 = vmatmul.mubr.msk.f32.vlgmr.msra.gmra.mxu0 %vm793_vm2, %v2423_v63  ;;  %v3936_v63 = vld [vmem:[%s5557_s5 + $0x30] sm:$0xff] }
0x1015   : > { %4316 = vmatpush3.msra.mxu0 %v2623_v59 }
0x1016   : > { %4317 = vmatprep.subr.mxu0 %v2621_v2  ;;  %v2870_v15 = vpop.permute.xlu0 %2869  ;;  %v2874_v18 = vpop.permute.xlu1 %2873 }
0x1017   : > { %4318 = vmatpush3.msra.mxu0 %v2621_v2 }
0x1018   : > { %v4527_v53 = vpop.eup %4526  ;;  %4322 = vmatprep.subr.mxu0 %v3935_v17 }
0x1019   : > { %v2616_v3 = vmul.f32 %v4527_v53, %v4519_v51 }
0x101a   : > { %v3159_v24 = vpop.permute.xlu0 %3158  ;;  %v2872_v19 = vpop.permute.xlu1 %2871 }
0x101b   : > { %4319 = vmatprep.mubr.msk.f32.mxu0 %vm793_vm2, %v2616_v3 }
0x101c   : > { %v4529_v5 = vpop.eup %4528 }
0x101d   : > { %v2617_v7 = vmul.f32 %v4529_v5, %v4521_v55 }
0x101e   : > { %v3153_v25 = vpop.permute.xlu0 %3152  ;;  %v3157_v22 = vpop.permute.xlu1 %3156 }
0x101f   : > { %4320 = vmatmul.mubr.msk.f32.vlgmr.msra.gmra.mxu0 %vm793_vm2, %v2617_v7 }
0x1020   : > { %4323 = vmatpush3.msra.mxu0 %v3935_v17 }
0x1021   : > { %4332 = vmatprep.subr.msk.mxu0 %vm707_vm1, %v2876_v10 }
0x1022   : > { %v3155_v26 = vpop.permute.xlu1 %3154 }
0x10d4   : > { %v4307_v13 = vpop.f32.mrf.mxu0 }
0x10d6   : > { %v2496_v14 = vpop.f32.mrf.mxu0 }
0x10d7   : > { %4329 = vmatprep.mubr.msk.f32.mxu1 %vm707_vm1, %v2496_v14 }
0x10d8   : > { %4330 = vmatmul.mubr.msk.f32.vlgmr.msra.gmra.mxu1 %vm707_vm1, %v4307_v13 }
0x10df   : > { %v4321_v16 = vpop.f32.mrf.mxu0 }
0x10e1   : > { %v2698_v21 = vpop.f32.mrf.mxu0 }
0x10e2   : > { %4324 = vmatprep.mubr.msk.f32.mxu0 %vm707_vm1, %v2698_v21 }
0x10e3   : > { %4325 = vmatmul.mubr.msk.f32.vlgmr.msra.gmra.mxu0 %vm707_vm1, %v4321_v16 }
0x10e4   : > { %4333 = vmatpush3.xpose.msk.msra.mxu0 %vm707_vm1, %v2876_v10  ;;  %4336 = vmatprep.mubr.msk.f32.mxu0 %vm707_vm1, %v2870_v15 }
0x10e5   : > { %4334 = vmatprep.subr.msk.mxu0 %vm707_vm1, %v2874_v18 }
0x10e8   : > { %4335 = vmatpush3.xpose.msk.msra.mxu0 %vm707_vm1, %v2874_v18 }
0x10e9   : > { %4351 = vmatprep.subr.msk.mxu0 %vm707_vm1, %v3159_v24 }
0x10eb   : > { %4337 = vmatmul.mubr.msk.f32.vlgmr.msra.gmra.mxu0 %vm707_vm1, %v2872_v19 }
0x10ec   : > { %4352 = vmatpush3.xpose.msk.msra.mxu0 %vm707_vm1, %v3159_v24  ;;  %4355 = vmatprep.mubr.msk.f32.mxu0 %vm707_vm1, %v3153_v25 }
0x10ed   : > { %4353 = vmatprep.subr.msk.mxu0 %vm707_vm1, %v3157_v22 }
0x10f0   : > { %4354 = vmatpush3.xpose.msk.msra.mxu0 %vm707_vm1, %v3157_v22 }
0x10f3   : > { %4356 = vmatmul.mubr.msk.f32.vlgmr.msra.gmra.mxu0 %vm707_vm1, %v3155_v26  ;;  %v3937_v26 = vld [vmem:[%s5557_s5 + $0x38] sm:$0xff] }
0x1198   : > { %v4331_v27 = vpop.f32.mrf.mxu1 }
0x119a   : > { %v2860_v15 = vpop.f32.mrf.mxu1 }
0x11a3   : > { %v4326_v28 = vpop.f32.mrf.mxu0 }
0x11a4   : > { %v5396_v29 = vadd.f32 %v4331_v27, %v4326_v28 }
0x11a5   : > { %v5398_v30 = vpop.f32.mrf.mxu0 }
0x11a6   : > { %v2861_v28 = vadd.f32 %v2860_v15, %v5398_v30 }
0x11ab   : > { %v4338_v31 = vpop.f32.mrf.mxu0 }
0x11ac   : > { %v2963_v33 = vsel %vm793_vm2, %v4338_v31, -inf }
0x11ad   : > { %2964 = vmax.xlane.f32.xlu1 %v2963_v33  ;;  %v2951_v34 = vpop.f32.mrf.mxu0 }
0x11ae   : > { %v2960_v35 = vsel %vm793_vm2, %v2951_v34, -inf }
0x11af   : > { %2961 = vmax.xlane.f32.xlu0 %v2960_v35 }
0x11b3   : > { %v4357_v36 = vpop.f32.mrf.mxu0 }
0x11b4   : > { %v3246_v59 = vsel %vm793_vm2, %v4357_v36, -inf }
0x11b5   : > { %v3234_v37 = vpop.f32.mrf.mxu0 }
0x11b6   : > { %v3243_v39 = vsel %vm793_vm2, %v3234_v37, -inf }
0x11be   : > { %2984 = vrot.lane.b32.xlu1 %v5316_v6, %s4724_s27 }
0x11e2   : > { %3244 = vmax.xlane.f32.xlu1 %v3243_v39 }
0x1236   : > { %v2965_v41 = vpop.xlane.xlu1 %2964 }
0x1237   : > { %v2967_v46 = vsub.f32 %v4338_v31, %v2965_v41 }
0x1238   : > { %v2962_v47 = vpop.xlane.xlu0 %2961 }
0x1239   : > { %v2970_v45 = vmul.f32 1.442695, %v2967_v46  ;;  %v2966_v48 = vsub.f32 %v2951_v34, %v2962_v47 }
0x123a   : > { %v2985_v43 = vpop.permute.xlu1 %2984 }
0x123b   : > { %4530 = vpow2.f32 %v2970_v45  ;;  %v2968_v49 = vmul.f32 1.442695, %v2966_v48  ;;  %4339 = vmatprep.subr.mxu1 %v2985_v43 }
0x123c   : > { %4340 = vmatpush3.msra.mxu1 %v2985_v43 }
0x123d   : > { %4532 = vpow2.f32 %v2968_v49 }
0x1248   : > { %v4531_v50 = vpop.eup %4530 }
0x1249   : > { %v2975_v51 = vsel %vm793_vm2, %v4531_v50, 0.0 }
0x124a   : > { %v4533_v52 = vpop.eup %4532  ;;  %2976 = vadd.xlane.f32.xlu0 %v2975_v51 }
0x124b   : > { %v2972_v55 = vsel %vm793_vm2, %v4533_v52, 0.0 }
0x124e   : > { %2973 = vadd.xlane.f32.xlu0 %v2972_v55 }
0x1264   : > { %2982 = vrot.lane.b32.xlu0 %v5318_v12, %s4724_s27  ;;  %s4644_s27 = sshll.u32 %s4727_s24, 4  ;;  %s4645_s27 = int_to_ptr.vmem [resolvable:$false] %s4644_s27 }
0x1265   : > { %s4646_s12 = scalar_lea.vmem %s4645_s27, 512  ;;  %p4647_p5 = scmp.lt.s32.totalorder %s5507_s15, %s4645_s27 }
0x1266   : > { %p4648_p2 = scmp.lt.s32.totalorder %s4646_s12, %s4640_s10 }
0x1268   : > { %p4649_p10 = por %p4648_p2, %p4647_p5 }
0x126a   : > { %p4650_p1 = pnand %p4649_p10, %p4643_p0 }
0x126b   : > { %v3245_v56 = vpop.xlane.xlu1 %3244 }
0x126c   : > { %v3249_v57 = vsub.f32 %v3234_v37, %v3245_v56  ;;  %v3438_v37 = vrot.slane %v5260_v32, %v1829_v60 }
0x126e   : > { %v3251_v11 = vmul.f32 1.442695, %v3249_v57 }
0x1270   : > { %4534 = vpow2.f32 %v3251_v11 }
0x127d   : > { %v4535_v8 = vpop.eup %4534 }
0x127e   : > { %v3255_v9 = vsel %vm793_vm2, %v4535_v8, 0.0 }
0x127f   : > { %3256 = vadd.xlane.f32.xlu1 %v3255_v9  ;;  %v2108_v9 = vld [vmem:[#allocation7 + $0x38] sm:$0xff] }
0x1280   : > { %4370 = vmatprep.subr.mxu0 %v2108_v9 }
0x1281   : > { %4371 = vmatpush3.msra.mxu0 %v2108_v9 }
0x1283   : > { %3247 = vmax.xlane.f32.xlu0 %v3246_v59  ;;  %v2106_v59 = vld [vmem:[#allocation7 + $0x28] sm:$0xff] }
0x1290   : > { %3267 = vrot.lane.b32.xlu1 %v5316_v6, %s4726_s17 }
0x12d3   : > { %v2977_v61 = vpop.xlane.xlu0 %2976 }
0x12d4   : > { %4536 = vrcp.f32 %v2977_v61  ;;  %v2105_v61 = vld [vmem:[#allocation7 + $0x20] sm:$0xff] }
0x12d7   : > { %v2974_v62 = vpop.xlane.xlu0 %2973 }
0x12d8   : > { %4538 = vrcp.f32 %v2974_v62  ;;  %v3945_v62 = vld [vmem:[%s5559_s7 + $0x78] sm:$0xff] }
0x12db   : > { %v2983_v0 = vpop.permute.xlu0 %2982 }
0x12dc   : > { %4341 = vmatprep.subr.mxu1 %v2983_v0 }
0x12dd   : > { %4342 = vmatpush3.msra.mxu1 %v2983_v0  ;;  %v3944_v0 = vld [vmem:[%s5559_s7 + $0x70] sm:$0xff] }
0x12de   : > { %4346 = vmatprep.subr.mxu1 %v3936_v63 }
0x12e1   : > { %v4537_v2 = vpop.eup %4536 }
0x12e2   : > { %v2981_v3 = vmul.f32 %v4537_v2, %v4531_v50  ;;  %v3942_v2 = vld [vmem:[%s5559_s7 + $0x60] sm:$0xff] }
0x12e5   : > { %v4539_v17 = vpop.eup %4538 }
0x12e6   : > { %v2980_v53 = vmul.f32 %v4539_v17, %v4533_v52 }
0x12e8   : > { %4343 = vmatprep.mubr.msk.f32.mxu1 %vm793_vm2, %v2980_v53 }
0x12e9   : > { %4344 = vmatmul.mubr.msk.f32.vlgmr.msra.gmra.mxu1 %vm793_vm2, %v2981_v3 }
0x12ea   : > { %4347 = vmatpush3.msra.mxu1 %v3936_v63  ;;  %v3943_v63 = vld [vmem:[%s5559_s7 + $0x68] sm:$0xff] }
0x1308   : > { %v3257_v6 = vpop.xlane.xlu1 %3256 }
0x130c   : > { %v3248_v5 = vpop.xlane.xlu0 %3247  ;;  %v3268_v7 = vpop.permute.xlu1 %3267 }
0x130d   : > { %v3250_v10 = vsub.f32 %v4357_v36, %v3248_v5  ;;  %4358 = vmatprep.subr.mxu1 %v3268_v7 }
0x130f   : > { %v3253_v40 = vmul.f32 1.442695, %v3250_v10 }
0x1311   : > { %4540 = vpow2.f32 %v3253_v40  ;;  %v3472_v40 = vrot.slane %v5260_v32, %v1864_v38  ;;  %v3940_v38 = vld [vmem:[%s5559_s7 + $0x50] sm:$0xff] }
0x1312   : > { %4542 = vrcp.f32 %v3257_v6 }
0x131e   : > { %v4541_v13 = vpop.eup %4540 }
0x131f   : > { %v3258_v14 = vsel %vm793_vm2, %v4541_v13, 0.0  ;;  %v4543_v16 = vpop.eup %4542 }
0x1320   : > { %3259 = vadd.xlane.f32.xlu0 %v3258_v14  ;;  %v3263_v19 = vmul.f32 %v4543_v16, %v4535_v8 }
0x1336   : > { %3265 = vrot.lane.b32.xlu0 %v5318_v12, %s4726_s17 }
0x13a9   : > { %v3260_v18 = vpop.xlane.xlu0 %3259  ;;  %v4345_v21 = vpop.f32.mrf.mxu1 }
0x13aa   : > { %4544 = vrcp.f32 %v3260_v18  ;;  %v3478_v18 = vrot.slane %v5260_v32, %v1870_v42  ;;  %v3939_v42 = vld [vmem:[%s5559_s7 + $0x48] sm:$0xff] }
0x13ab   : > { %v3060_v24 = vpop.f32.mrf.mxu1 }
0x13ac   : > { %4348 = vmatprep.mubr.msk.f32.mxu1 %vm707_vm1, %v3060_v24 }
0x13ad   : > { %v3266_v25 = vpop.permute.xlu0 %3265  ;;  %4349 = vmatmul.mubr.msk.f32.vlgmr.msra.gmra.mxu1 %vm707_vm1, %v4345_v21 }
0x13ae   : > { %4359 = vmatpush3.msra.mxu1 %v3268_v7  ;;  %4362 = vmatprep.mubr.msk.f32.mxu1 %vm793_vm2, %v3263_v19 }
0x13af   : > { %4360 = vmatprep.subr.mxu1 %v3266_v25 }
0x13b0   : > { %4361 = vmatpush3.msra.mxu1 %v3266_v25  ;;  %v3941_v25 = vld [vmem:[%s5559_s7 + $0x58] sm:$0xff] }
0x13b1   : > { %4365 = vmatprep.subr.mxu1 %v3937_v26 }
0x13b7   : > { %v4545_v22 = vpop.eup %4544 }
0x13b8   : > { %v3264_v12 = vmul.f32 %v4545_v22, %v4541_v13  ;;  %v3938_v22 = vld [vmem:[%s5559_s7 + $0x40] sm:$0xff] }
0x13ba   : > { %4363 = vmatmul.mubr.msk.f32.vlgmr.msra.gmra.mxu1 %vm793_vm2, %v3264_v12  ;;  %v3985_v12 = vld [vmem:[%s5561_s9 + $0x1] ss:$0 sm:$0xff] }
0x13bb   : > { %4366 = vmatpush3.msra.mxu1 %v3937_v26 }
0x13bc   : > { %4381 = vmatprep.subr.mxu1 %v3945_v62 }
0x146d   : > { %v4350_v27 = vpop.f32.mrf.mxu1 }
0x146e   : > { %v3151_v31 = vadd.f32 %v4350_v27, %v5396_v29 }
0x146f   : > { %v3141_v33 = vpop.f32.mrf.mxu1 }
0x1470   : > { %v3150_v34 = vadd.f32 %v3141_v33, %v2861_v28 }
0x147a   : > { %v4364_v35 = vpop.f32.mrf.mxu1 }
0x147c   : > { %v3343_v36 = vpop.f32.mrf.mxu1 }
0x147d   : > { %4367 = vmatprep.mubr.msk.f32.mxu1 %vm707_vm1, %v3343_v36 }
0x147e   : > { %4368 = vmatmul.mubr.msk.f32.vlgmr.msra.gmra.mxu1 %vm707_vm1, %v4364_v35  ;;  %v3573_v35 = vrot.slane %v5260_v32, %v1965_v54 }
0x147f   : > { %4382 = vmatpush3.msra.mxu1 %v3945_v62 }
0x1480   : > { %4383 = vmatprep.subr.mxu1 %v3944_v0 }
0x1481   : > { %4384 = vmatpush3.msra.mxu1 %v3944_v0  ;;  %v3990_v0 = vld [vmem:[%s5560_s8 + $0x18] ss:$0 sm:$0xff] }
0x1482   : > { %4385 = vmatprep.subr.mxu1 %v3943_v63 }
0x1483   : > { %4386 = vmatpush3.msra.mxu1 %v3943_v63 }
0x1484   : > { %4387 = vmatprep.subr.mxu1 %v3942_v2 }
0x1485   : > { %4388 = vmatpush3.msra.mxu1 %v3942_v2 }
0x1486   : > { %4389 = vmatprep.subr.mxu1 %v3941_v25 }
0x1487   : > { %4390 = vmatpush3.msra.mxu1 %v3941_v25 }
0x1488   : > { %4391 = vmatprep.subr.mxu1 %v3940_v38 }
0x1489   : > { %4392 = vmatpush3.msra.mxu1 %v3940_v38 }
0x148a   : > { %4393 = vmatprep.subr.mxu1 %v3939_v42 }
0x148b   : > { %4394 = vmatpush3.msra.mxu1 %v3939_v42  ;;  %v3695_v42 = vld [vmem:[%s5603_s11] sm:$0x3] }
0x148c   : > { %4395 = vmatprep.subr.mxu1 %v3938_v22 }
0x148d   : > { %4396 = vmatpush3.msra.mxu1 %v3938_v22  ;;  %v3725_v22 = vrot.slane %v3695_v42, %v5045_v23 }
0x153e   : > { %v4369_v39 = vpop.f32.mrf.mxu1 }
0x153f   : > { %v3434_v41 = vadd.f32 %v4369_v39, %v3151_v31 }
0x1540   : > { %v3424_v46 = vpop.f32.mrf.mxu1 }
0x1541   : > { %v3440_v47 = vadd.f32 %v3438_v37, %v3434_v41  ;;  %v3433_v45 = vadd.f32 %v3424_v46, %v3150_v34 }
0x1543   : > { %v3439_v30 = vadd.f32 %v3438_v37, %v3433_v45  ;;  %v3442_v29 = vadd.f32 %v3440_v47, %v5291_v20 }
0x1545   : > { %v3446_v48 = vsel %vm516_vm0, %v3442_v29, 0.0  ;;  %v3441_v43 = vadd.f32 %v3439_v30, %v5279_v58  ;;  %v2107_v58 = vld [vmem:[#allocation7 + $0x30] sm:$0xff] }
0x1546   : > { %3447 = vadd.xlane.f32.xlu0 %v3446_v48  ;;  %4372 = vmatprep.subr.mxu0 %v2107_v58 }
0x1547   : > { %v3443_v49 = vsel %vm516_vm0, %v3441_v43, 0.0  ;;  %4373 = vmatpush3.msra.mxu0 %v2107_v58  ;;  %v3686_v58 = vrot.slane %v5260_v32, %v2079_v44 }
0x1548   : > { %3444 = vadd.xlane.f32.xlu1 %v3443_v49  ;;  %4374 = vmatprep.subr.mxu0 %v2106_v59 }
0x1549   : > { %4375 = vmatpush3.msra.mxu0 %v2106_v59 }
0x154a   : > { %4376 = vmatprep.subr.mxu0 %v2105_v61 }
0x154b   : > { %4377 = vmatpush3.msra.mxu0 %v2105_v61 }
0x15cf   : > { %v3448_v50 = vpop.xlane.xlu0 %3447 }
0x15d0   : > { %v3450_v51 = vmul.f32 0.03125, %v3448_v50 }
0x15d1   : > { %v3445_v52 = vpop.xlane.xlu1 %3444 }
0x15d2   : > { %v3452_v60 = vsub.f32 %v3442_v29, %v3450_v51  ;;  %v3449_v55 = vmul.f32 0.03125, %v3445_v52 }
0x15d4   : > { %v3451_v56 = vsub.f32 %v3441_v43, %v3449_v55  ;;  %v3454_v57 = vmul.f32 %v3452_v60, %v3452_v60 }
0x15d6   : > { %v3458_v11 = vsel %vm516_vm0, %v3454_v57, 0.0  ;;  %v3453_v8 = vmul.f32 %v3451_v56, %v3451_v56 }
0x15d7   : > { %3459 = vadd.xlane.f32.xlu0 %v3458_v11 }
0x15d8   : > { %v3455_v20 = vsel %vm516_vm0, %v3453_v8, 0.0 }
0x15d9   : > { %3456 = vadd.xlane.f32.xlu1 %v3455_v20 }
0x1660   : > { %v3460_v17 = vpop.xlane.xlu0 %3459 }
0x1661   : > { %v3462_v53 = vmul.f32 0.03125, %v3460_v17 }
0x1662   : > { %v3457_v3 = vpop.xlane.xlu1 %3456 }
0x1663   : > { %v3464_v6 = vadd.f32 1e-05, %v3462_v53  ;;  %v3461_v5 = vmul.f32 0.03125, %v3457_v3 }
0x1665   : > { %4546 = vrsqrt.f32 %v3464_v6  ;;  %v3463_v7 = vadd.f32 1e-05, %v3461_v5 }
0x1667   : > { %4548 = vrsqrt.f32 %v3463_v7 }
0x1672   : > { %v4547_v10 = vpop.eup %4546 }
0x1673   : > { %v3468_v13 = vmul.f32 %v4547_v10, %v3452_v60 }
0x1674   : > { %v4549_v14 = vpop.eup %4548 }
0x1675   : > { %v3467_v15 = vmul.f32 %v4549_v14, %v3451_v56  ;;  %v3474_v16 = vmul.f32 %v3472_v40, %v3468_v13 }
0x1677   : > { %v3473_v21 = vmul.f32 %v3472_v40, %v3467_v15  ;;  %v3480_v19 = vadd.f32 %v3478_v18, %v3474_v16 }
0x1679   : > { %v3479_v24 = vadd.f32 %v3478_v18, %v3473_v21 }
0x167b   : > { %4378 = vmatprep.mubr.msk.f32.mxu0 %vm516_vm0, %v3479_v24 }
0x167c   : > { %4379 = vmatmul.mubr.msk.f32.vlgmr.msra.gmra.mxu0 %vm516_vm0, %v3480_v19 }
0x173c   : > { %v4380_v26 = vpop.f32.mrf.mxu0 }
0x173d   : > { %v3565_v27 = vadd.f32 %v4380_v26, %v3985_v12  ;;  %v3731_v26 = vrot.slane %v3695_v42, %v4990_v4 }
0x173e   : > { %v3559_v28 = vpop.f32.mrf.mxu0 }
0x173f   : > { %v3560_v31 = vadd.f32 %v3985_v12, %v3559_v28  ;;  %v3569_v34 = vmax.f32 %v3565_v27, 0.0 }
0x1741   : > { %v3568_v33 = vmax.f32 %v3560_v31, 0.0 }
0x1743   : > { %4397 = vmatprep.mubr.msk.f32.mxu1 %vm1967_vm3, %v3568_v33 }
0x1744   : > { %4398 = vmatmul.mubr.msk.f32.vlgmr.msra.gmra.mxu1 %vm1967_vm3, %v3569_v34 }
0x1804   : > { %v4399_v36 = vpop.f32.mrf.mxu1 }
0x1805   : > { %v3652_v37 = vadd.f32 %v4399_v36, %v3573_v35 }
0x1806   : > { %v3646_v39 = vpop.f32.mrf.mxu1 }
0x1807   : > { %v3647_v41 = vadd.f32 %v3646_v39, %v3573_v35  ;;  %v3656_v46 = vadd.f32 %v3652_v37, %v3480_v19 }
0x1809   : > { %v3660_v47 = vsel %vm516_vm0, %v3656_v46, 0.0  ;;  %v3655_v45 = vadd.f32 %v3647_v41, %v3479_v24 }
0x180a   : > { %3661 = vadd.xlane.f32.xlu0 %v3660_v47 }
0x180b   : > { %v3657_v30 = vsel %vm516_vm0, %v3655_v45, 0.0 }
0x180c   : > { %3658 = vadd.xlane.f32.xlu1 %v3657_v30 }
0x1893   : > { %v3662_v29 = vpop.xlane.xlu0 %3661 }
0x1894   : > { %v3664_v48 = vmul.f32 0.03125, %v3662_v29 }
0x1895   : > { %v3659_v43 = vpop.xlane.xlu1 %3658 }
0x1896   : > { %v3666_v49 = vsub.f32 %v3656_v46, %v3664_v48  ;;  %v3663_v50 = vmul.f32 0.03125, %v3659_v43 }
0x1898   : > { %v3665_v51 = vsub.f32 %v3655_v45, %v3663_v50  ;;  %v3668_v52 = vmul.f32 %v3666_v49, %v3666_v49 }
0x189a   : > { %v3672_v54 = vsel %vm516_vm0, %v3668_v52, 0.0  ;;  %v3667_v60 = vmul.f32 %v3665_v51, %v3665_v51 }
0x189b   : > { %3673 = vadd.xlane.f32.xlu0 %v3672_v54 }
0x189c   : > { %v3669_v55 = vsel %vm516_vm0, %v3667_v60, 0.0 }
0x189d   : > { %3670 = vadd.xlane.f32.xlu1 %v3669_v55 }
0x1924   : > { %v3674_v56 = vpop.xlane.xlu0 %3673 }
0x1925   : > { %v3676_v57 = vmul.f32 0.03125, %v3674_v56 }
0x1926   : > { %v3671_v11 = vpop.xlane.xlu1 %3670 }
0x1927   : > { %v3678_v8 = vadd.f32 1e-05, %v3676_v57  ;;  %v3675_v20 = vmul.f32 0.03125, %v3671_v11 }
0x1929   : > { %4550 = vrsqrt.f32 %v3678_v8  ;;  %v3677_v9 = vadd.f32 1e-05, %v3675_v20 }
0x192b   : > { %4552 = vrsqrt.f32 %v3677_v9 }
0x1936   : > { %v4551_v59 = vpop.eup %4550 }
0x1937   : > { %v3682_v61 = vmul.f32 %v4551_v59, %v3666_v49 }
0x1938   : > { %v4553_v62 = vpop.eup %4552 }
0x1939   : > { %v3688_v63 = vmul.f32 %v3686_v58, %v3682_v61  ;;  %v3681_v2 = vmul.f32 %v4553_v62, %v3665_v51 }
0x193b   : > { %v3694_v17 = vadd.f32 %v3990_v0, %v3688_v63  ;;  %v3687_v53 = vmul.f32 %v3686_v58, %v3681_v2 }
0x193d   : > { %v3699_v3 = vsel %vm516_vm0, %v3694_v17, 0.0  ;;  %v3693_v6 = vadd.f32 %v3990_v0, %v3687_v53 }
0x193e   : > { %3700 = vadd.xlane.f32.xlu0 %v3699_v3 }
0x193f   : > { %v3696_v5 = vsel %vm516_vm0, %v3693_v6, 0.0 }
0x1940   : > { %3697 = vadd.xlane.f32.xlu1 %v3696_v5 }
0x19c7   : > { %v3701_v1 = vpop.xlane.xlu0 %3700 }
0x19c8   : > { %v3703_v32 = vmul.f32 0.03125, %v3701_v1 }
0x19c9   : > { %v3698_v44 = vpop.xlane.xlu1 %3697 }
0x19ca   : > { %v3705_v7 = vsub.f32 %v3694_v17, %v3703_v32  ;;  %v3702_v10 = vmul.f32 0.03125, %v3698_v44 }
0x19cc   : > { %v3704_v40 = vsub.f32 %v3693_v6, %v3702_v10  ;;  %v3707_v13 = vmul.f32 %v3705_v7, %v3705_v7 }
0x19ce   : > { %v3711_v14 = vsel %vm516_vm0, %v3707_v13, 0.0  ;;  %v3706_v15 = vmul.f32 %v3704_v40, %v3704_v40 }
0x19cf   : > { %3712 = vadd.xlane.f32.xlu0 %v3711_v14 }
0x19d0   : > { %v3708_v16 = vsel %vm516_vm0, %v3706_v15, 0.0 }
0x19d1   : > { %3709 = vadd.xlane.f32.xlu1 %v3708_v16 }
0x1a58   : > { %v3713_v18 = vpop.xlane.xlu0 %3712 }
0x1a59   : > { %v3715_v21 = vmul.f32 0.03125, %v3713_v18 }
0x1a5a   : > { %v3710_v24 = vpop.xlane.xlu1 %3709 }
0x1a5b   : > { %v3717_v19 = vadd.f32 1e-05, %v3715_v21  ;;  %v3714_v25 = vmul.f32 0.03125, %v3710_v24 }
0x1a5d   : > { %4554 = vrsqrt.f32 %v3717_v19  ;;  %v3716_v38 = vadd.f32 1e-05, %v3714_v25 }
0x1a5f   : > { %4556 = vrsqrt.f32 %v3716_v38 }
0x1a6a   : > { %v4555_v12 = vpop.eup %4554 }
0x1a6b   : > { %v3721_v27 = vmul.f32 %v4555_v12, %v3705_v7 }
0x1a6c   : > { %v4557_v28 = vpop.eup %4556 }
0x1a6d   : > { %v3727_v31 = vmul.f32 %v3725_v22, %v3721_v27  ;;  %v3720_v33 = vmul.f32 %v4557_v28, %v3704_v40 }
0x1a6f   : > { %v3733_v34 = vadd.f32 %v3731_v26, %v3727_v31  ;;  %v3726_v35 = vmul.f32 %v3725_v22, %v3720_v33 }
0x1a71   : > { %v3732_v4 = vadd.f32 %v3731_v26, %v3726_v35  ;;  %3735 = vst.msk [vmem:[%s473_s19 + $0x8] sm:$0xff] %vm516_vm0, %v3733_v34 }
0x1a73   : > { %3734 = vst.msk [vmem:[%s473_s19] sm:$0xff] %vm516_vm0, %v3732_v4 }
0x1a74   : > { %4653 = shalt.err (!%p4650_p1)
}
0x1a75   : > { %s4654_s17 = scalar_lea.hbm %s5505_s28, 256  ;;  %s4658_s29 = scalar_lea.hbm %s5605_s14, 512 }
0x1a76   : > { %p4655_p4 = scmp.ne.s32.totalorder %s5505_s28, %s4654_s17  ;;  %p4659_p8 = scmp.lt.s32.totalorder %s5505_s28, %s5605_s14 }
0x1a77   : > { %p4660_p11 = scmp.lt.s32.totalorder %s4658_s29, %s4654_s17 }
0x1a78   : > { %p4656_p3 = pnand %p4655_p4, %p5606_p12 }
0x1a79   : > { %p4661_p6 = por %p4660_p11, %p4659_p8 }
0x1a7a   : > { %p4657_p7 = pneg %p4656_p3 }
0x1a7c   : > { %p4662_p9 = pnand %p4661_p6, %p4657_p7 }
0x1a7e   : > { %4665 = shalt.err (!%p4662_p9)
}
0x1a7f   : > { %s4728_s11 = smov 128   ;;  %s4729_s25 = smov 8  }
0x1a80   : > { %4408 = dma.vmem_to_hbm [thread:$0]  (%p5606_p12), %s5507_s15, 256, %s5505_s28, %s3737_s21, %s4728_s11, %s4728_s11, %s4729_s25  }
0x1a81 PF: > { %s5607_s19 = sld [smem:[#allocation13_spill]]  ;;  %p5610_p0 = scmp.ge.s32.totalorder %s4712_s20, 2 }
0x1a82   : > { %s5608_s13 = sld [smem:[#allocation15_spill]] }
0x1a87   : > { %s3765_s16 = sand.u32 1, %s5607_s19  }
0x1a88   : > { %p5609_p13 = scmp.ne.s32.totalorder %s5608_s13, 0  ;;  %s3766_s10 = scalar_lea.sflag [#allocation4], %s3765_s16 }
0x1a8a   : > { %p4422_p5 = pnand %p5610_p0, %p5609_p13 }
0x1a8c   : > { %p4423_p2 = pneg %p4422_p5 }
0x1a8e   : > { %4695 = dma.done.wait (%p4423_p2), %s3766_s10, 256  }
0x1a8f   : > { %4697 = vsyncadd (%p4423_p2), %s3766_s10, 4294967040  ;;  %s5611_s20 = sld [smem:[#allocation16_spill]]  ;;  %s5614_s17 = smov %s4704_s18 }
0x1a90   : > { %s5612_s24 = sld [smem:[#allocation14_spill]] }
0x1a91   : > { %s5613_s19 = sld [smem:[#allocation17_spill]] }
0x1a95   : > { %p27_p10 = scmp.ge.s32.totalorder %s5611_s20, 4  }
0x1a96   : > { %s5615_s18 = smov %s5612_s24 }
0x1a97   :  { %29 = sbr.rel (!%p27_p10) target bundleno = 12 (0xc), region = 136 }
0x1a9c   :  { %3771 = vsyncpa [#allocation3], 1 }
0x1a9d   :  { %3773 = vsyncpa [#allocation3 + $0x1], 1 }
0x1a9e   :  { %3774 = vsyncpa [#allocation6], 1 }
0x1a9f   :  { %3776 = vsyncpa [#allocation6 + $0x1], 1 }
0x1aa0   :  { %3777 = vsyncpa [#allocation4], 1 }
0x1aa1   :  { %3779 = vsyncpa [#allocation4 + $0x1], 1 }

</bundles_post_ra>
